<compile_context>
chip_gen: v7x
topology: tpu7x:2x2x1
jax: 0.10.0
libtpu: 0.0.40
codegen_flags: <defaults>
</compile_context>

<pallas_src>
import numpy as np

import jax
import jax.numpy as jnp
from jax.experimental import pallas as pl
from jax.experimental.pallas import tpu as pltpu

# LeNet geometry implied by fc1 = Linear(16*4*4, 120) -> 1x28x28 inputs.
H_IN = 28              # input spatial size
C1, C2 = 6, 16         # conv output channels
KS = 5                 # conv kernel size
H1 = H_IN - KS + 1     # 24, conv1 output rows/cols
P1 = H1 // 2           # 12, pool1 output
H2 = P1 - KS + 1       # 8,  conv2 output
P2 = H2 // 2           # 4,  pool2 output
F_IN = C2 * P2 * P2    # 256, fc1 fan-in
FC1, FC2, FC3 = 120, 84, 10
LANE = 128             # lane-padded width


# ---------------------------------------------------------------------------
# One-time host-side weight re-layout
# ---------------------------------------------------------------------------
def _conv_lane_weights(w, in_w, out_w):
    """Toeplitz matrices implementing a valid KSxKS conv as, for each kernel
    row ki, a (rows, in_w*in_c) x (in_w*in_c, out_w*out_c) matmul on an
    activation with rows = image rows and lanes = (column, channel)."""
    out_c, in_c, kh, kw = w.shape
    m = np.zeros((kh, in_w * in_c, out_w * out_c), np.float32)
    for ki in range(kh):
        for x in range(out_w):
            for kj in range(kw):
                j = x + kj
                m[ki, j * in_c:(j + 1) * in_c, x * out_c:(x + 1) * out_c] = \
                    w[:, :, ki, kj].T
    return m


def _merge_pooled_conv(m, out_w, out_c, in_pad):
    """Fold the column half of the 2x2 max-pool into the Toeplitz weights and
    merge even/odd halves into one N=2*LANE matrix: even-column outputs in
    lanes [0, LANE), odd-column outputs in lanes [LANE, 2*LANE), each half
    zero-padded to a 128-lane boundary.  The contraction (input-lane) dim is
    zero-padded to `in_pad` rows."""
    k, rows, _ = m.shape
    m4 = m.reshape(k, rows, out_w, out_c)
    half = (out_w // 2) * out_c
    even = np.ascontiguousarray(m4[:, :, 0::2, :]).reshape(k, rows, half)
    odd = np.ascontiguousarray(m4[:, :, 1::2, :]).reshape(k, rows, half)
    out = np.zeros((k, in_pad, 2 * LANE), np.float32)
    out[:, :rows, :half] = even
    out[:, :rows, LANE:LANE + half] = odd
    return out


def prepare_params(params):
    """Re-layout PyTorch-style params into the slabs the fused kernel eats.
    Called once, outside the forward pass."""
    w1 = np.asarray(params["conv1_w"], np.float32)     # (6, 1, 5, 5)
    b1 = np.asarray(params["conv1_b"], np.float32)
    w2 = np.asarray(params["conv2_w"], np.float32)     # (16, 6, 5, 5)
    b2 = np.asarray(params["conv2_b"], np.float32)

    m1 = _conv_lane_weights(w1, in_w=H_IN, out_w=H1)   # (5, 28, 144)
    m2 = _conv_lane_weights(w2, in_w=P1, out_w=H2)     # (5, 72, 128)
    m1c = _merge_pooled_conv(m1, H1, C1, in_pad=H_IN)  # (5, 28, 256)
    m2c = _merge_pooled_conv(m2, H2, C2, in_pad=LANE)  # (5, 128, 256)

    # fc1 as P2=4 accumulated (128,128) chunks, one per pooled conv2 row r;
    # chunk rows are ordered (w, c) to match p2's lane layout (lane = w*C2+c).
    fc1_w = np.asarray(params["fc1_w"], np.float32)    # (120, 256)
    w1c = np.zeros((P2, LANE, LANE), np.float32)
    w1c[:, :P2 * C2, :FC1] = (fc1_w.reshape(FC1, C2, P2, P2)
                              .transpose(2, 3, 1, 0)    # (h, w, c, out)
                              .reshape(P2, P2 * C2, FC1))

    fc2_w = np.asarray(params["fc2_w"], np.float32)    # (84, 120)
    fc3_w = np.asarray(params["fc3_w"], np.float32)    # (10, 84)
    wfc = np.zeros((2, LANE, LANE), np.float32)
    wfc[0, :FC1, :FC2] = fc2_w.T
    wfc[1, :FC2, :FC3] = fc3_w.T

    # Bias slab: one lane-padded row per layer (padded lanes stay zero).
    bias = np.zeros((5, LANE), np.float32)
    bias[0, :P1 * C1] = np.tile(b1, P1)    # conv1, lanes = (pooled col, ch)
    bias[1, :P2 * C2] = np.tile(b2, P2)    # conv2
    bias[2, :FC1] = np.asarray(params["fc1_b"], np.float32)
    bias[3, :FC2] = np.asarray(params["fc2_b"], np.float32)
    bias[4, :FC3] = np.asarray(params["fc3_b"], np.float32)

    return tuple(jnp.asarray(a) for a in (m1c, m2c, w1c, wfc, bias))


# ---------------------------------------------------------------------------
# The single fused Pallas kernel (bt samples per grid step)
# ---------------------------------------------------------------------------
def _convnet_kernel(x_ref, m1_ref, m2_ref, w1_ref, wfc_ref, b_ref, o_ref,
                    a1_buf, p1_buf, a2_buf, p2_buf):
    f32 = jnp.float32
    bt = x_ref.shape[0]

    # ---- conv1 (1->6, 5x5); column half of the 2x2 pool folded into the
    #      weights (even half -> lanes 0..127, odd half -> lanes 128..255).
    #      Batch stacked along M: (bt*24, 28) x (28, 256) per kernel row.
    lhs = x_ref[:, 0:H1, :].reshape(bt * H1, H_IN)
    acc = jnp.dot(lhs, m1_ref[0], preferred_element_type=f32)
    for ki in range(1, KS):
        lhs = x_ref[:, ki:ki + H1, :].reshape(bt * H1, H_IN)
        acc = acc + jnp.dot(lhs, m1_ref[ki], preferred_element_type=f32)
    a1 = jnp.maximum(acc[:, :LANE], acc[:, LANE:])       # even/odd column max
    a1 = jnp.maximum(a1 + b_ref[0:1, :], 0.0)            # bias + ReLU
    a1_buf[...] = a1.reshape(bt, H1, LANE)

    # Row half of the 2x2 pool: pairwise max of adjacent conv rows.  Pure
    # VPU / load-store work, off the MXU critical path (unrolled, 12 pairs).
    for p in range(P1):
        p1_buf[:, p, :] = jnp.maximum(a1_buf[:, 2 * p, :],
                                      a1_buf[:, 2 * p + 1, :])

    # ---- conv2 (6->16, 5x5) + pool, same scheme: (bt*8, 128) x (128, 256).
    lhs = p1_buf[:, 0:H2, :].reshape(bt * H2, LANE)
    acc = jnp.dot(lhs, m2_ref[0], preferred_element_type=f32)
    for ki in range(1, KS):
        lhs = p1_buf[:, ki:ki + H2, :].reshape(bt * H2, LANE)
        acc = acc + jnp.dot(lhs, m2_ref[ki], preferred_element_type=f32)
    a2 = jnp.maximum(acc[:, :LANE], acc[:, LANE:])
    a2 = jnp.maximum(a2 + b_ref[1:2, :], 0.0)
    a2_buf[...] = a2.reshape(bt, H2, LANE)
    for p in range(P2):
        p2_buf[:, p, :] = jnp.maximum(a2_buf[:, 2 * p, :],
                                      a2_buf[:, 2 * p + 1, :])

    # ---- fc1: accumulate over the P2=4 pooled rows (no flatten / concat).
    h = jnp.dot(p2_buf[:, 0, :], w1_ref[0], preferred_element_type=f32)
    for r in range(1, P2):
        h = h + jnp.dot(p2_buf[:, r, :], w1_ref[r], preferred_element_type=f32)
    h = jnp.maximum(h + b_ref[2:3, :], 0.0)              # (bt, 128)

    # ---- fc2 / fc3 (lane-padded to 128; padded lanes stay exactly zero).
    h = jnp.maximum(jnp.dot(h, wfc_ref[0], preferred_element_type=f32)
                    + b_ref[3:4, :], 0.0)
    out = jnp.dot(h, wfc_ref[1], preferred_element_type=f32) + b_ref[4:5, :]
    o_ref[:, 0, :] = out                                 # lane-dense store


# ---------------------------------------------------------------------------
# Forward wrapper: one pallas_call for the whole network, batch-tiled grid
# ---------------------------------------------------------------------------
def convnet_forward(x, prep, batch_tile=128):
    n = x.shape[0]
    x3 = x.reshape(n, H_IN, H_IN).astype(jnp.float32)
    m1c, m2c, w1c, wfc, bias = prep

    # Batch tile: big enough to fill the MXU M dimension, small enough for
    # v7x's 64 MiB VMEM; keep >= 2 grid steps when possible so both v7x
    # TensorCores get work (no-op on single-TC v5e/v6e).
    if n <= 1:
        bt = 1
    else:
        bt = min(batch_tile, (n + 1) // 2)
    grid_n = -(-n // bt)
    n_pad = grid_n * bt
    if n_pad != n:
        x3 = jnp.concatenate(
            [x3, jnp.zeros((n_pad - n, H_IN, H_IN), jnp.float32)], axis=0)

    weights = (m1c, m2c, w1c, wfc, bias)

    def const_spec(a):
        if a.ndim == 2:
            return pl.BlockSpec(a.shape, lambda i: (0, 0))
        return pl.BlockSpec(a.shape, lambda i: (0, 0, 0))

    out = pl.pallas_call(
        _convnet_kernel,
        out_shape=jax.ShapeDtypeStruct((n_pad, 1, LANE), jnp.float32),
        grid=(grid_n,),
        in_specs=[pl.BlockSpec((bt, H_IN, H_IN), lambda i: (i, 0, 0))]
                 + [const_spec(a) for a in weights],
        out_specs=pl.BlockSpec((bt, 1, LANE), lambda i: (i, 0, 0)),
        scratch_shapes=[
            pltpu.VMEM((bt, H1, LANE), jnp.float32),   # conv1 pre-row-pool
            pltpu.VMEM((bt, P1, LANE), jnp.float32),   # pool1 output
            pltpu.VMEM((bt, H2, LANE), jnp.float32),   # conv2 pre-row-pool
            pltpu.VMEM((bt, P2, LANE), jnp.float32),   # pool2 output
        ],
        compiler_params=pltpu.CompilerParams(
            dimension_semantics=("parallel",),          # batch shards over TCs
            vmem_limit_bytes=48 * 1024 * 1024,          # v5e default is 16 MiB
        ),
    )(x3, *weights)

    return out.reshape(n_pad, LANE)[:n, :FC3]            # real logits


# ---------------------------------------------------------------------------
# Deterministic parameter init (PyTorch default: U(-1/sqrt(fan_in), +))
# ---------------------------------------------------------------------------
def init_params(key):
    def u(k, shape, fan_in):
        bound = 1.0 / (fan_in ** 0.5)
        return jax.random.uniform(k, shape, jnp.float32, -bound, bound)

    ks = jax.random.split(key, 10)
    return {
        "conv1_w": u(ks[0], (C1, 1, KS, KS), 1 * KS * KS),
        "conv1_b": u(ks[1], (C1,), 1 * KS * KS),
        "conv2_w": u(ks[2], (C2, C1, KS, KS), C1 * KS * KS),
        "conv2_b": u(ks[3], (C2,), C1 * KS * KS),
        "fc1_w":   u(ks[4], (FC1, F_IN), F_IN),
        "fc1_b":   u(ks[5], (FC1,), F_IN),
        "fc2_w":   u(ks[6], (FC2, FC1), FC1),
        "fc2_b":   u(ks[7], (FC2,), FC1),
        "fc3_w":   u(ks[8], (FC3, FC2), FC2),
        "fc3_b":   u(ks[9], (FC3,), FC2),
    }


if __name__ == "__main__":
    key = jax.random.PRNGKey(0)
    pkey, xkey = jax.random.split(key)
    params = init_params(pkey)
    prep = prepare_params(params)                    # one-time weight re-layout

    # fc1 = Linear(16*4*4, 120) implies 1x28x28 inputs; batch = 2.
    x = jax.random.normal(xkey, (2, 1, H_IN, H_IN), dtype=jnp.float32)

    fwd = jax.jit(convnet_forward)
    out = jax.block_until_ready(fwd(x, prep))
    assert out.shape == (2, FC3), out.shape
    assert out.dtype == jnp.float32
    print("KERNEL_OK")
</pallas_src>

<mosaic_0001>
module attributes {stable_mosaic.version = 11 : i64} {
  func.func @_convnet_kernel(%arg0: i32, %arg1: memref<1x28x28xf32, #tpu.memory_space<vmem>>, %arg2: memref<5x28x256xf32, #tpu.memory_space<vmem>>, %arg3: memref<5x128x256xf32, #tpu.memory_space<vmem>>, %arg4: memref<4x128x128xf32, #tpu.memory_space<vmem>>, %arg5: memref<2x128x128xf32, #tpu.memory_space<vmem>>, %arg6: memref<5x128xf32, #tpu.memory_space<vmem>>, %arg7: memref<1x1x128xf32, #tpu.memory_space<vmem>>, %arg8: memref<1x24x128xf32, #tpu.memory_space<vmem>>, %arg9: memref<1x12x128xf32, #tpu.memory_space<vmem>>, %arg10: memref<1x8x128xf32, #tpu.memory_space<vmem>>, %arg11: memref<1x4x128xf32, #tpu.memory_space<vmem>>) attributes {dimension_semantics = [#tpu.dimension_semantics<parallel>], iteration_bounds = array<i64: 2>, scalar_prefetch = 0 : i64, scratch_operands = 4 : i64, tpu.core_type = #tpu.core_type<tc>, window_params = [{transform_indices = @transform_0, window_bounds = array<i64: 1, 28, 28>}, {pipeline_mode = #tpu.pipeline_mode<synchronous>, transform_indices = @transform_1, window_bounds = array<i64: 5, 28, 256>}, {pipeline_mode = #tpu.pipeline_mode<synchronous>, transform_indices = @transform_2, window_bounds = array<i64: 5, 128, 256>}, {pipeline_mode = #tpu.pipeline_mode<synchronous>, transform_indices = @transform_3, window_bounds = array<i64: 4, 128, 128>}, {pipeline_mode = #tpu.pipeline_mode<synchronous>, transform_indices = @transform_4, window_bounds = array<i64: 2, 128, 128>}, {pipeline_mode = #tpu.pipeline_mode<synchronous>, transform_indices = @transform_5, window_bounds = array<i64: 5, 128>}, {transform_indices = @transform_6, window_bounds = array<i64: 1, 1, 128>}]} {
    %c0 = arith.constant 0 : index
    %c0_0 = arith.constant 0 : index
    %c0_1 = arith.constant 0 : index
    %0 = vector.load %arg1[%c0, %c0_0, %c0_1] : memref<1x28x28xf32, #tpu.memory_space<vmem>>, vector<1x24x28xf32>
    %1 = vector.shape_cast %0 : vector<1x24x28xf32> to vector<24x28xf32>
    %c0_2 = arith.constant 0 : index
    %c0_3 = arith.constant 0 : index
    %c0_4 = arith.constant 0 : index
    %2 = vector.load %arg2[%c0_2, %c0_3, %c0_4] : memref<5x28x256xf32, #tpu.memory_space<vmem>>, vector<1x28x256xf32>
    %3 = vector.shape_cast %2 : vector<1x28x256xf32> to vector<28x256xf32>
    %cst = arith.constant dense<0.000000e+00> : vector<24x256xf32>
    %4 = tpu.matmul %1, %3, %cst {dimension_numbers = #tpu.dot_dimension_numbers<[1], [0], [0], [1], [0, 0, 1, 1], [], []>} : vector<24x28xf32>, vector<28x256xf32>, vector<24x256xf32> -> vector<24x256xf32>
    %c0_5 = arith.constant 0 : index
    %c1 = arith.constant 1 : index
    %c0_6 = arith.constant 0 : index
    %5 = vector.load %arg1[%c0_5, %c1, %c0_6] : memref<1x28x28xf32, #tpu.memory_space<vmem>>, vector<1x24x28xf32>
    %6 = vector.shape_cast %5 : vector<1x24x28xf32> to vector<24x28xf32>
    %c1_7 = arith.constant 1 : index
    %c0_8 = arith.constant 0 : index
    %c0_9 = arith.constant 0 : index
    %7 = vector.load %arg2[%c1_7, %c0_8, %c0_9] : memref<5x28x256xf32, #tpu.memory_space<vmem>>, vector<1x28x256xf32>
    %8 = vector.shape_cast %7 : vector<1x28x256xf32> to vector<28x256xf32>
    %cst_10 = arith.constant dense<0.000000e+00> : vector<24x256xf32>
    %9 = tpu.matmul %6, %8, %cst_10 {dimension_numbers = #tpu.dot_dimension_numbers<[1], [0], [0], [1], [0, 0, 1, 1], [], []>} : vector<24x28xf32>, vector<28x256xf32>, vector<24x256xf32> -> vector<24x256xf32>
    %10 = arith.addf %4, %9 : vector<24x256xf32>
    %c0_11 = arith.constant 0 : index
    %c2 = arith.constant 2 : index
    %c0_12 = arith.constant 0 : index
    %11 = vector.load %arg1[%c0_11, %c2, %c0_12] : memref<1x28x28xf32, #tpu.memory_space<vmem>>, vector<1x24x28xf32>
    %12 = vector.shape_cast %11 : vector<1x24x28xf32> to vector<24x28xf32>
    %c2_13 = arith.constant 2 : index
    %c0_14 = arith.constant 0 : index
    %c0_15 = arith.constant 0 : index
    %13 = vector.load %arg2[%c2_13, %c0_14, %c0_15] : memref<5x28x256xf32, #tpu.memory_space<vmem>>, vector<1x28x256xf32>
    %14 = vector.shape_cast %13 : vector<1x28x256xf32> to vector<28x256xf32>
    %cst_16 = arith.constant dense<0.000000e+00> : vector<24x256xf32>
    %15 = tpu.matmul %12, %14, %cst_16 {dimension_numbers = #tpu.dot_dimension_numbers<[1], [0], [0], [1], [0, 0, 1, 1], [], []>} : vector<24x28xf32>, vector<28x256xf32>, vector<24x256xf32> -> vector<24x256xf32>
    %16 = arith.addf %10, %15 : vector<24x256xf32>
    %c0_17 = arith.constant 0 : index
    %c3 = arith.constant 3 : index
    %c0_18 = arith.constant 0 : index
    %17 = vector.load %arg1[%c0_17, %c3, %c0_18] : memref<1x28x28xf32, #tpu.memory_space<vmem>>, vector<1x24x28xf32>
    %18 = vector.shape_cast %17 : vector<1x24x28xf32> to vector<24x28xf32>
    %c3_19 = arith.constant 3 : index
    %c0_20 = arith.constant 0 : index
    %c0_21 = arith.constant 0 : index
    %19 = vector.load %arg2[%c3_19, %c0_20, %c0_21] : memref<5x28x256xf32, #tpu.memory_space<vmem>>, vector<1x28x256xf32>
    %20 = vector.shape_cast %19 : vector<1x28x256xf32> to vector<28x256xf32>
    %cst_22 = arith.constant dense<0.000000e+00> : vector<24x256xf32>
    %21 = tpu.matmul %18, %20, %cst_22 {dimension_numbers = #tpu.dot_dimension_numbers<[1], [0], [0], [1], [0, 0, 1, 1], [], []>} : vector<24x28xf32>, vector<28x256xf32>, vector<24x256xf32> -> vector<24x256xf32>
    %22 = arith.addf %16, %21 : vector<24x256xf32>
    %c0_23 = arith.constant 0 : index
    %c4 = arith.constant 4 : index
    %c0_24 = arith.constant 0 : index
    %23 = vector.load %arg1[%c0_23, %c4, %c0_24] : memref<1x28x28xf32, #tpu.memory_space<vmem>>, vector<1x24x28xf32>
    %24 = vector.shape_cast %23 : vector<1x24x28xf32> to vector<24x28xf32>
    %c4_25 = arith.constant 4 : index
    %c0_26 = arith.constant 0 : index
    %c0_27 = arith.constant 0 : index
    %25 = vector.load %arg2[%c4_25, %c0_26, %c0_27] : memref<5x28x256xf32, #tpu.memory_space<vmem>>, vector<1x28x256xf32>
    %26 = vector.shape_cast %25 : vector<1x28x256xf32> to vector<28x256xf32>
    %cst_28 = arith.constant dense<0.000000e+00> : vector<24x256xf32>
    %27 = tpu.matmul %24, %26, %cst_28 {dimension_numbers = #tpu.dot_dimension_numbers<[1], [0], [0], [1], [0, 0, 1, 1], [], []>} : vector<24x28xf32>, vector<28x256xf32>, vector<24x256xf32> -> vector<24x256xf32>
    %28 = arith.addf %22, %27 : vector<24x256xf32>
    %29 = vector.extract_strided_slice %28 {offsets = [0, 0], sizes = [24, 128], strides = [1, 1]} : vector<24x256xf32> to vector<24x128xf32>
    %30 = vector.extract_strided_slice %28 {offsets = [0, 128], sizes = [24, 128], strides = [1, 1]} : vector<24x256xf32> to vector<24x128xf32>
    %31 = arith.maximumf %29, %30 : vector<24x128xf32>
    %c0_29 = arith.constant 0 : index
    %c0_30 = arith.constant 0 : index
    %32 = vector.load %arg6[%c0_29, %c0_30] : memref<5x128xf32, #tpu.memory_space<vmem>>, vector<1x128xf32>
    %33 = vector.broadcast %32 : vector<1x128xf32> to vector<24x128xf32>
    %34 = arith.addf %31, %33 : vector<24x128xf32>
    %cst_31 = arith.constant 0.000000e+00 : f32
    %35 = vector.broadcast %cst_31 : f32 to vector<24x128xf32>
    %36 = arith.maximumf %34, %35 : vector<24x128xf32>
    %37 = vector.shape_cast %36 : vector<24x128xf32> to vector<1x24x128xf32>
    %c0_32 = arith.constant 0 : index
    %c0_33 = arith.constant 0 : index
    %c0_34 = arith.constant 0 : index
    %38 = vector.load %arg8[%c0_32, %c0_33, %c0_34] : memref<1x24x128xf32, #tpu.memory_space<vmem>>, vector<1x24x128xf32>
    tpu.vector_store %arg8[%c0_32, %c0_33, %c0_34], %37 {strides = array<i32>} : memref<1x24x128xf32, #tpu.memory_space<vmem>>, vector<1x24x128xf32>,
    %c0_35 = arith.constant 0 : index
    %c0_36 = arith.constant 0 : index
    %c0_37 = arith.constant 0 : index
    %39 = vector.load %arg8[%c0_35, %c0_36, %c0_37] : memref<1x24x128xf32, #tpu.memory_space<vmem>>, vector<1x1x128xf32>
    %40 = vector.shape_cast %39 : vector<1x1x128xf32> to vector<1x128xf32>
    %c0_38 = arith.constant 0 : index
    %c1_39 = arith.constant 1 : index
    %c0_40 = arith.constant 0 : index
    %41 = vector.load %arg8[%c0_38, %c1_39, %c0_40] : memref<1x24x128xf32, #tpu.memory_space<vmem>>, vector<1x1x128xf32>
    %42 = vector.shape_cast %41 : vector<1x1x128xf32> to vector<1x128xf32>
    %43 = arith.maximumf %40, %42 : vector<1x128xf32>
    %c0_41 = arith.constant 0 : index
    %c0_42 = arith.constant 0 : index
    %c0_43 = arith.constant 0 : index
    %44 = vector.load %arg9[%c0_41, %c0_42, %c0_43] : memref<1x12x128xf32, #tpu.memory_space<vmem>>, vector<1x1x128xf32>
    %45 = vector.shape_cast %44 : vector<1x1x128xf32> to vector<1x128xf32>
    %46 = vector.shape_cast %43 : vector<1x128xf32> to vector<1x1x128xf32>
    tpu.vector_store %arg9[%c0_41, %c0_42, %c0_43], %46 {strides = array<i32>} : memref<1x12x128xf32, #tpu.memory_space<vmem>>, vector<1x1x128xf32>,
    %c0_44 = arith.constant 0 : index
    %c2_45 = arith.constant 2 : index
    %c0_46 = arith.constant 0 : index
    %47 = vector.load %arg8[%c0_44, %c2_45, %c0_46] : memref<1x24x128xf32, #tpu.memory_space<vmem>>, vector<1x1x128xf32>
    %48 = vector.shape_cast %47 : vector<1x1x128xf32> to vector<1x128xf32>
    %c0_47 = arith.constant 0 : index
    %c3_48 = arith.constant 3 : index
    %c0_49 = arith.constant 0 : index
    %49 = vector.load %arg8[%c0_47, %c3_48, %c0_49] : memref<1x24x128xf32, #tpu.memory_space<vmem>>, vector<1x1x128xf32>
    %50 = vector.shape_cast %49 : vector<1x1x128xf32> to vector<1x128xf32>
    %51 = arith.maximumf %48, %50 : vector<1x128xf32>
    %c0_50 = arith.constant 0 : index
    %c1_51 = arith.constant 1 : index
    %c0_52 = arith.constant 0 : index
    %52 = vector.load %arg9[%c0_50, %c1_51, %c0_52] : memref<1x12x128xf32, #tpu.memory_space<vmem>>, vector<1x1x128xf32>
    %53 = vector.shape_cast %52 : vector<1x1x128xf32> to vector<1x128xf32>
    %54 = vector.shape_cast %51 : vector<1x128xf32> to vector<1x1x128xf32>
    tpu.vector_store %arg9[%c0_50, %c1_51, %c0_52], %54 {strides = array<i32>} : memref<1x12x128xf32, #tpu.memory_space<vmem>>, vector<1x1x128xf32>,
    %c0_53 = arith.constant 0 : index
    %c4_54 = arith.constant 4 : index
    %c0_55 = arith.constant 0 : index
    %55 = vector.load %arg8[%c0_53, %c4_54, %c0_55] : memref<1x24x128xf32, #tpu.memory_space<vmem>>, vector<1x1x128xf32>
    %56 = vector.shape_cast %55 : vector<1x1x128xf32> to vector<1x128xf32>
    %c0_56 = arith.constant 0 : index
    %c5 = arith.constant 5 : index
    %c0_57 = arith.constant 0 : index
    %57 = vector.load %arg8[%c0_56, %c5, %c0_57] : memref<1x24x128xf32, #tpu.memory_space<vmem>>, vector<1x1x128xf32>
    %58 = vector.shape_cast %57 : vector<1x1x128xf32> to vector<1x128xf32>
    %59 = arith.maximumf %56, %58 : vector<1x128xf32>
    %c0_58 = arith.constant 0 : index
    %c2_59 = arith.constant 2 : index
    %c0_60 = arith.constant 0 : index
    %60 = vector.load %arg9[%c0_58, %c2_59, %c0_60] : memref<1x12x128xf32, #tpu.memory_space<vmem>>, vector<1x1x128xf32>
    %61 = vector.shape_cast %60 : vector<1x1x128xf32> to vector<1x128xf32>
    %62 = vector.shape_cast %59 : vector<1x128xf32> to vector<1x1x128xf32>
    tpu.vector_store %arg9[%c0_58, %c2_59, %c0_60], %62 {strides = array<i32>} : memref<1x12x128xf32, #tpu.memory_space<vmem>>, vector<1x1x128xf32>,
    %c0_61 = arith.constant 0 : index
    %c6 = arith.constant 6 : index
    %c0_62 = arith.constant 0 : index
    %63 = vector.load %arg8[%c0_61, %c6, %c0_62] : memref<1x24x128xf32, #tpu.memory_space<vmem>>, vector<1x1x128xf32>
    %64 = vector.shape_cast %63 : vector<1x1x128xf32> to vector<1x128xf32>
    %c0_63 = arith.constant 0 : index
    %c7 = arith.constant 7 : index
    %c0_64 = arith.constant 0 : index
    %65 = vector.load %arg8[%c0_63, %c7, %c0_64] : memref<1x24x128xf32, #tpu.memory_space<vmem>>, vector<1x1x128xf32>
    %66 = vector.shape_cast %65 : vector<1x1x128xf32> to vector<1x128xf32>
    %67 = arith.maximumf %64, %66 : vector<1x128xf32>
    %c0_65 = arith.constant 0 : index
    %c3_66 = arith.constant 3 : index
    %c0_67 = arith.constant 0 : index
    %68 = vector.load %arg9[%c0_65, %c3_66, %c0_67] : memref<1x12x128xf32, #tpu.memory_space<vmem>>, vector<1x1x128xf32>
    %69 = vector.shape_cast %68 : vector<1x1x128xf32> to vector<1x128xf32>
    %70 = vector.shape_cast %67 : vector<1x128xf32> to vector<1x1x128xf32>
    tpu.vector_store %arg9[%c0_65, %c3_66, %c0_67], %70 {strides = array<i32>} : memref<1x12x128xf32, #tpu.memory_space<vmem>>, vector<1x1x128xf32>,
    %c0_68 = arith.constant 0 : index
    %c8 = arith.constant 8 : index
    %c0_69 = arith.constant 0 : index
    %71 = vector.load %arg8[%c0_68, %c8, %c0_69] : memref<1x24x128xf32, #tpu.memory_space<vmem>>, vector<1x1x128xf32>
    %72 = vector.shape_cast %71 : vector<1x1x128xf32> to vector<1x128xf32>
    %c0_70 = arith.constant 0 : index
    %c9 = arith.constant 9 : index
    %c0_71 = arith.constant 0 : index
    %73 = vector.load %arg8[%c0_70, %c9, %c0_71] : memref<1x24x128xf32, #tpu.memory_space<vmem>>, vector<1x1x128xf32>
    %74 = vector.shape_cast %73 : vector<1x1x128xf32> to vector<1x128xf32>
    %75 = arith.maximumf %72, %74 : vector<1x128xf32>
    %c0_72 = arith.constant 0 : index
    %c4_73 = arith.constant 4 : index
    %c0_74 = arith.constant 0 : index
    %76 = vector.load %arg9[%c0_72, %c4_73, %c0_74] : memref<1x12x128xf32, #tpu.memory_space<vmem>>, vector<1x1x128xf32>
    %77 = vector.shape_cast %76 : vector<1x1x128xf32> to vector<1x128xf32>
    %78 = vector.shape_cast %75 : vector<1x128xf32> to vector<1x1x128xf32>
    tpu.vector_store %arg9[%c0_72, %c4_73, %c0_74], %78 {strides = array<i32>} : memref<1x12x128xf32, #tpu.memory_space<vmem>>, vector<1x1x128xf32>,
    %c0_75 = arith.constant 0 : index
    %c10 = arith.constant 10 : index
    %c0_76 = arith.constant 0 : index
    %79 = vector.load %arg8[%c0_75, %c10, %c0_76] : memref<1x24x128xf32, #tpu.memory_space<vmem>>, vector<1x1x128xf32>
    %80 = vector.shape_cast %79 : vector<1x1x128xf32> to vector<1x128xf32>
    %c0_77 = arith.constant 0 : index
    %c11 = arith.constant 11 : index
    %c0_78 = arith.constant 0 : index
    %81 = vector.load %arg8[%c0_77, %c11, %c0_78] : memref<1x24x128xf32, #tpu.memory_space<vmem>>, vector<1x1x128xf32>
    %82 = vector.shape_cast %81 : vector<1x1x128xf32> to vector<1x128xf32>
    %83 = arith.maximumf %80, %82 : vector<1x128xf32>
    %c0_79 = arith.constant 0 : index
    %c5_80 = arith.constant 5 : index
    %c0_81 = arith.constant 0 : index
    %84 = vector.load %arg9[%c0_79, %c5_80, %c0_81] : memref<1x12x128xf32, #tpu.memory_space<vmem>>, vector<1x1x128xf32>
    %85 = vector.shape_cast %84 : vector<1x1x128xf32> to vector<1x128xf32>
    %86 = vector.shape_cast %83 : vector<1x128xf32> to vector<1x1x128xf32>
    tpu.vector_store %arg9[%c0_79, %c5_80, %c0_81], %86 {strides = array<i32>} : memref<1x12x128xf32, #tpu.memory_space<vmem>>, vector<1x1x128xf32>,
    %c0_82 = arith.constant 0 : index
    %c12 = arith.constant 12 : index
    %c0_83 = arith.constant 0 : index
    %87 = vector.load %arg8[%c0_82, %c12, %c0_83] : memref<1x24x128xf32, #tpu.memory_space<vmem>>, vector<1x1x128xf32>
    %88 = vector.shape_cast %87 : vector<1x1x128xf32> to vector<1x128xf32>
    %c0_84 = arith.constant 0 : index
    %c13 = arith.constant 13 : index
    %c0_85 = arith.constant 0 : index
    %89 = vector.load %arg8[%c0_84, %c13, %c0_85] : memref<1x24x128xf32, #tpu.memory_space<vmem>>, vector<1x1x128xf32>
    %90 = vector.shape_cast %89 : vector<1x1x128xf32> to vector<1x128xf32>
    %91 = arith.maximumf %88, %90 : vector<1x128xf32>
    %c0_86 = arith.constant 0 : index
    %c6_87 = arith.constant 6 : index
    %c0_88 = arith.constant 0 : index
    %92 = vector.load %arg9[%c0_86, %c6_87, %c0_88] : memref<1x12x128xf32, #tpu.memory_space<vmem>>, vector<1x1x128xf32>
    %93 = vector.shape_cast %92 : vector<1x1x128xf32> to vector<1x128xf32>
    %94 = vector.shape_cast %91 : vector<1x128xf32> to vector<1x1x128xf32>
    tpu.vector_store %arg9[%c0_86, %c6_87, %c0_88], %94 {strides = array<i32>} : memref<1x12x128xf32, #tpu.memory_space<vmem>>, vector<1x1x128xf32>,
    %c0_89 = arith.constant 0 : index
    %c14 = arith.constant 14 : index
    %c0_90 = arith.constant 0 : index
    %95 = vector.load %arg8[%c0_89, %c14, %c0_90] : memref<1x24x128xf32, #tpu.memory_space<vmem>>, vector<1x1x128xf32>
    %96 = vector.shape_cast %95 : vector<1x1x128xf32> to vector<1x128xf32>
    %c0_91 = arith.constant 0 : index
    %c15 = arith.constant 15 : index
    %c0_92 = arith.constant 0 : index
    %97 = vector.load %arg8[%c0_91, %c15, %c0_92] : memref<1x24x128xf32, #tpu.memory_space<vmem>>, vector<1x1x128xf32>
    %98 = vector.shape_cast %97 : vector<1x1x128xf32> to vector<1x128xf32>
    %99 = arith.maximumf %96, %98 : vector<1x128xf32>
    %c0_93 = arith.constant 0 : index
    %c7_94 = arith.constant 7 : index
    %c0_95 = arith.constant 0 : index
    %100 = vector.load %arg9[%c0_93, %c7_94, %c0_95] : memref<1x12x128xf32, #tpu.memory_space<vmem>>, vector<1x1x128xf32>
    %101 = vector.shape_cast %100 : vector<1x1x128xf32> to vector<1x128xf32>
    %102 = vector.shape_cast %99 : vector<1x128xf32> to vector<1x1x128xf32>
    tpu.vector_store %arg9[%c0_93, %c7_94, %c0_95], %102 {strides = array<i32>} : memref<1x12x128xf32, #tpu.memory_space<vmem>>, vector<1x1x128xf32>,
    %c0_96 = arith.constant 0 : index
    %c16 = arith.constant 16 : index
    %c0_97 = arith.constant 0 : index
    %103 = vector.load %arg8[%c0_96, %c16, %c0_97] : memref<1x24x128xf32, #tpu.memory_space<vmem>>, vector<1x1x128xf32>
    %104 = vector.shape_cast %103 : vector<1x1x128xf32> to vector<1x128xf32>
    %c0_98 = arith.constant 0 : index
    %c17 = arith.constant 17 : index
    %c0_99 = arith.constant 0 : index
    %105 = vector.load %arg8[%c0_98, %c17, %c0_99] : memref<1x24x128xf32, #tpu.memory_space<vmem>>, vector<1x1x128xf32>
    %106 = vector.shape_cast %105 : vector<1x1x128xf32> to vector<1x128xf32>
    %107 = arith.maximumf %104, %106 : vector<1x128xf32>
    %c0_100 = arith.constant 0 : index
    %c8_101 = arith.constant 8 : index
    %c0_102 = arith.constant 0 : index
    %108 = vector.load %arg9[%c0_100, %c8_101, %c0_102] : memref<1x12x128xf32, #tpu.memory_space<vmem>>, vector<1x1x128xf32>
    %109 = vector.shape_cast %108 : vector<1x1x128xf32> to vector<1x128xf32>
    %110 = vector.shape_cast %107 : vector<1x128xf32> to vector<1x1x128xf32>
    tpu.vector_store %arg9[%c0_100, %c8_101, %c0_102], %110 {strides = array<i32>} : memref<1x12x128xf32, #tpu.memory_space<vmem>>, vector<1x1x128xf32>,
    %c0_103 = arith.constant 0 : index
    %c18 = arith.constant 18 : index
    %c0_104 = arith.constant 0 : index
    %111 = vector.load %arg8[%c0_103, %c18, %c0_104] : memref<1x24x128xf32, #tpu.memory_space<vmem>>, vector<1x1x128xf32>
    %112 = vector.shape_cast %111 : vector<1x1x128xf32> to vector<1x128xf32>
    %c0_105 = arith.constant 0 : index
    %c19 = arith.constant 19 : index
    %c0_106 = arith.constant 0 : index
    %113 = vector.load %arg8[%c0_105, %c19, %c0_106] : memref<1x24x128xf32, #tpu.memory_space<vmem>>, vector<1x1x128xf32>
    %114 = vector.shape_cast %113 : vector<1x1x128xf32> to vector<1x128xf32>
    %115 = arith.maximumf %112, %114 : vector<1x128xf32>
    %c0_107 = arith.constant 0 : index
    %c9_108 = arith.constant 9 : index
    %c0_109 = arith.constant 0 : index
    %116 = vector.load %arg9[%c0_107, %c9_108, %c0_109] : memref<1x12x128xf32, #tpu.memory_space<vmem>>, vector<1x1x128xf32>
    %117 = vector.shape_cast %116 : vector<1x1x128xf32> to vector<1x128xf32>
    %118 = vector.shape_cast %115 : vector<1x128xf32> to vector<1x1x128xf32>
    tpu.vector_store %arg9[%c0_107, %c9_108, %c0_109], %118 {strides = array<i32>} : memref<1x12x128xf32, #tpu.memory_space<vmem>>, vector<1x1x128xf32>,
    %c0_110 = arith.constant 0 : index
    %c20 = arith.constant 20 : index
    %c0_111 = arith.constant 0 : index
    %119 = vector.load %arg8[%c0_110, %c20, %c0_111] : memref<1x24x128xf32, #tpu.memory_space<vmem>>, vector<1x1x128xf32>
    %120 = vector.shape_cast %119 : vector<1x1x128xf32> to vector<1x128xf32>
    %c0_112 = arith.constant 0 : index
    %c21 = arith.constant 21 : index
    %c0_113 = arith.constant 0 : index
    %121 = vector.load %arg8[%c0_112, %c21, %c0_113] : memref<1x24x128xf32, #tpu.memory_space<vmem>>, vector<1x1x128xf32>
    %122 = vector.shape_cast %121 : vector<1x1x128xf32> to vector<1x128xf32>
    %123 = arith.maximumf %120, %122 : vector<1x128xf32>
    %c0_114 = arith.constant 0 : index
    %c10_115 = arith.constant 10 : index
    %c0_116 = arith.constant 0 : index
    %124 = vector.load %arg9[%c0_114, %c10_115, %c0_116] : memref<1x12x128xf32, #tpu.memory_space<vmem>>, vector<1x1x128xf32>
    %125 = vector.shape_cast %124 : vector<1x1x128xf32> to vector<1x128xf32>
    %126 = vector.shape_cast %123 : vector<1x128xf32> to vector<1x1x128xf32>
    tpu.vector_store %arg9[%c0_114, %c10_115, %c0_116], %126 {strides = array<i32>} : memref<1x12x128xf32, #tpu.memory_space<vmem>>, vector<1x1x128xf32>,
    %c0_117 = arith.constant 0 : index
    %c22 = arith.constant 22 : index
    %c0_118 = arith.constant 0 : index
    %127 = vector.load %arg8[%c0_117, %c22, %c0_118] : memref<1x24x128xf32, #tpu.memory_space<vmem>>, vector<1x1x128xf32>
    %128 = vector.shape_cast %127 : vector<1x1x128xf32> to vector<1x128xf32>
    %c0_119 = arith.constant 0 : index
    %c23 = arith.constant 23 : index
    %c0_120 = arith.constant 0 : index
    %129 = vector.load %arg8[%c0_119, %c23, %c0_120] : memref<1x24x128xf32, #tpu.memory_space<vmem>>, vector<1x1x128xf32>
    %130 = vector.shape_cast %129 : vector<1x1x128xf32> to vector<1x128xf32>
    %131 = arith.maximumf %128, %130 : vector<1x128xf32>
    %c0_121 = arith.constant 0 : index
    %c11_122 = arith.constant 11 : index
    %c0_123 = arith.constant 0 : index
    %132 = vector.load %arg9[%c0_121, %c11_122, %c0_123] : memref<1x12x128xf32, #tpu.memory_space<vmem>>, vector<1x1x128xf32>
    %133 = vector.shape_cast %132 : vector<1x1x128xf32> to vector<1x128xf32>
    %134 = vector.shape_cast %131 : vector<1x128xf32> to vector<1x1x128xf32>
    tpu.vector_store %arg9[%c0_121, %c11_122, %c0_123], %134 {strides = array<i32>} : memref<1x12x128xf32, #tpu.memory_space<vmem>>, vector<1x1x128xf32>,
    %c0_124 = arith.constant 0 : index
    %c0_125 = arith.constant 0 : index
    %c0_126 = arith.constant 0 : index
    %135 = vector.load %arg9[%c0_124, %c0_125, %c0_126] : memref<1x12x128xf32, #tpu.memory_space<vmem>>, vector<1x8x128xf32>
    %136 = vector.shape_cast %135 : vector<1x8x128xf32> to vector<8x128xf32>
    %c0_127 = arith.constant 0 : index
    %c0_128 = arith.constant 0 : index
    %c0_129 = arith.constant 0 : index
    %137 = vector.load %arg3[%c0_127, %c0_128, %c0_129] : memref<5x128x256xf32, #tpu.memory_space<vmem>>, vector<1x128x256xf32>
    %138 = vector.shape_cast %137 : vector<1x128x256xf32> to vector<128x256xf32>
    %cst_130 = arith.constant dense<0.000000e+00> : vector<8x256xf32>
    %139 = tpu.matmul %136, %138, %cst_130 {dimension_numbers = #tpu.dot_dimension_numbers<[1], [0], [0], [1], [0, 0, 1, 1], [], []>} : vector<8x128xf32>, vector<128x256xf32>, vector<8x256xf32> -> vector<8x256xf32>
    %c0_131 = arith.constant 0 : index
    %c1_132 = arith.constant 1 : index
    %c0_133 = arith.constant 0 : index
    %140 = vector.load %arg9[%c0_131, %c1_132, %c0_133] : memref<1x12x128xf32, #tpu.memory_space<vmem>>, vector<1x8x128xf32>
    %141 = vector.shape_cast %140 : vector<1x8x128xf32> to vector<8x128xf32>
    %c1_134 = arith.constant 1 : index
    %c0_135 = arith.constant 0 : index
    %c0_136 = arith.constant 0 : index
    %142 = vector.load %arg3[%c1_134, %c0_135, %c0_136] : memref<5x128x256xf32, #tpu.memory_space<vmem>>, vector<1x128x256xf32>
    %143 = vector.shape_cast %142 : vector<1x128x256xf32> to vector<128x256xf32>
    %cst_137 = arith.constant dense<0.000000e+00> : vector<8x256xf32>
    %144 = tpu.matmul %141, %143, %cst_137 {dimension_numbers = #tpu.dot_dimension_numbers<[1], [0], [0], [1], [0, 0, 1, 1], [], []>} : vector<8x128xf32>, vector<128x256xf32>, vector<8x256xf32> -> vector<8x256xf32>
    %145 = arith.addf %139, %144 : vector<8x256xf32>
    %c0_138 = arith.constant 0 : index
    %c2_139 = arith.constant 2 : index
    %c0_140 = arith.constant 0 : index
    %146 = vector.load %arg9[%c0_138, %c2_139, %c0_140] : memref<1x12x128xf32, #tpu.memory_space<vmem>>, vector<1x8x128xf32>
    %147 = vector.shape_cast %146 : vector<1x8x128xf32> to vector<8x128xf32>
    %c2_141 = arith.constant 2 : index
    %c0_142 = arith.constant 0 : index
    %c0_143 = arith.constant 0 : index
    %148 = vector.load %arg3[%c2_141, %c0_142, %c0_143] : memref<5x128x256xf32, #tpu.memory_space<vmem>>, vector<1x128x256xf32>
    %149 = vector.shape_cast %148 : vector<1x128x256xf32> to vector<128x256xf32>
    %cst_144 = arith.constant dense<0.000000e+00> : vector<8x256xf32>
    %150 = tpu.matmul %147, %149, %cst_144 {dimension_numbers = #tpu.dot_dimension_numbers<[1], [0], [0], [1], [0, 0, 1, 1], [], []>} : vector<8x128xf32>, vector<128x256xf32>, vector<8x256xf32> -> vector<8x256xf32>
    %151 = arith.addf %145, %150 : vector<8x256xf32>
    %c0_145 = arith.constant 0 : index
    %c3_146 = arith.constant 3 : index
    %c0_147 = arith.constant 0 : index
    %152 = vector.load %arg9[%c0_145, %c3_146, %c0_147] : memref<1x12x128xf32, #tpu.memory_space<vmem>>, vector<1x8x128xf32>
    %153 = vector.shape_cast %152 : vector<1x8x128xf32> to vector<8x128xf32>
    %c3_148 = arith.constant 3 : index
    %c0_149 = arith.constant 0 : index
    %c0_150 = arith.constant 0 : index
    %154 = vector.load %arg3[%c3_148, %c0_149, %c0_150] : memref<5x128x256xf32, #tpu.memory_space<vmem>>, vector<1x128x256xf32>
    %155 = vector.shape_cast %154 : vector<1x128x256xf32> to vector<128x256xf32>
    %cst_151 = arith.constant dense<0.000000e+00> : vector<8x256xf32>
    %156 = tpu.matmul %153, %155, %cst_151 {dimension_numbers = #tpu.dot_dimension_numbers<[1], [0], [0], [1], [0, 0, 1, 1], [], []>} : vector<8x128xf32>, vector<128x256xf32>, vector<8x256xf32> -> vector<8x256xf32>
    %157 = arith.addf %151, %156 : vector<8x256xf32>
    %c0_152 = arith.constant 0 : index
    %c4_153 = arith.constant 4 : index
    %c0_154 = arith.constant 0 : index
    %158 = vector.load %arg9[%c0_152, %c4_153, %c0_154] : memref<1x12x128xf32, #tpu.memory_space<vmem>>, vector<1x8x128xf32>
    %159 = vector.shape_cast %158 : vector<1x8x128xf32> to vector<8x128xf32>
    %c4_155 = arith.constant 4 : index
    %c0_156 = arith.constant 0 : index
    %c0_157 = arith.constant 0 : index
    %160 = vector.load %arg3[%c4_155, %c0_156, %c0_157] : memref<5x128x256xf32, #tpu.memory_space<vmem>>, vector<1x128x256xf32>
    %161 = vector.shape_cast %160 : vector<1x128x256xf32> to vector<128x256xf32>
    %cst_158 = arith.constant dense<0.000000e+00> : vector<8x256xf32>
    %162 = tpu.matmul %159, %161, %cst_158 {dimension_numbers = #tpu.dot_dimension_numbers<[1], [0], [0], [1], [0, 0, 1, 1], [], []>} : vector<8x128xf32>, vector<128x256xf32>, vector<8x256xf32> -> vector<8x256xf32>
    %163 = arith.addf %157, %162 : vector<8x256xf32>
    %164 = vector.extract_strided_slice %163 {offsets = [0, 0], sizes = [8, 128], strides = [1, 1]} : vector<8x256xf32> to vector<8x128xf32>
    %165 = vector.extract_strided_slice %163 {offsets = [0, 128], sizes = [8, 128], strides = [1, 1]} : vector<8x256xf32> to vector<8x128xf32>
    %166 = arith.maximumf %164, %165 : vector<8x128xf32>
    %c1_159 = arith.constant 1 : index
    %c0_160 = arith.constant 0 : index
    %167 = vector.load %arg6[%c1_159, %c0_160] : memref<5x128xf32, #tpu.memory_space<vmem>>, vector<1x128xf32>
    %168 = vector.broadcast %167 : vector<1x128xf32> to vector<8x128xf32>
    %169 = arith.addf %166, %168 : vector<8x128xf32>
    %cst_161 = arith.constant 0.000000e+00 : f32
    %170 = vector.broadcast %cst_161 : f32 to vector<8x128xf32>
    %171 = arith.maximumf %169, %170 : vector<8x128xf32>
    %172 = vector.shape_cast %171 : vector<8x128xf32> to vector<1x8x128xf32>
    %c0_162 = arith.constant 0 : index
    %c0_163 = arith.constant 0 : index
    %c0_164 = arith.constant 0 : index
    %173 = vector.load %arg10[%c0_162, %c0_163, %c0_164] : memref<1x8x128xf32, #tpu.memory_space<vmem>>, vector<1x8x128xf32>
    tpu.vector_store %arg10[%c0_162, %c0_163, %c0_164], %172 {strides = array<i32>} : memref<1x8x128xf32, #tpu.memory_space<vmem>>, vector<1x8x128xf32>,
    %c0_165 = arith.constant 0 : index
    %c0_166 = arith.constant 0 : index
    %c0_167 = arith.constant 0 : index
    %174 = vector.load %arg10[%c0_165, %c0_166, %c0_167] : memref<1x8x128xf32, #tpu.memory_space<vmem>>, vector<1x1x128xf32>
    %175 = vector.shape_cast %174 : vector<1x1x128xf32> to vector<1x128xf32>
    %c0_168 = arith.constant 0 : index
    %c1_169 = arith.constant 1 : index
    %c0_170 = arith.constant 0 : index
    %176 = vector.load %arg10[%c0_168, %c1_169, %c0_170] : memref<1x8x128xf32, #tpu.memory_space<vmem>>, vector<1x1x128xf32>
    %177 = vector.shape_cast %176 : vector<1x1x128xf32> to vector<1x128xf32>
    %178 = arith.maximumf %175, %177 : vector<1x128xf32>
    %c0_171 = arith.constant 0 : index
    %c0_172 = arith.constant 0 : index
    %c0_173 = arith.constant 0 : index
    %179 = vector.load %arg11[%c0_171, %c0_172, %c0_173] : memref<1x4x128xf32, #tpu.memory_space<vmem>>, vector<1x1x128xf32>
    %180 = vector.shape_cast %179 : vector<1x1x128xf32> to vector<1x128xf32>
    %181 = vector.shape_cast %178 : vector<1x128xf32> to vector<1x1x128xf32>
    tpu.vector_store %arg11[%c0_171, %c0_172, %c0_173], %181 {strides = array<i32>} : memref<1x4x128xf32, #tpu.memory_space<vmem>>, vector<1x1x128xf32>,
    %c0_174 = arith.constant 0 : index
    %c2_175 = arith.constant 2 : index
    %c0_176 = arith.constant 0 : index
    %182 = vector.load %arg10[%c0_174, %c2_175, %c0_176] : memref<1x8x128xf32, #tpu.memory_space<vmem>>, vector<1x1x128xf32>
    %183 = vector.shape_cast %182 : vector<1x1x128xf32> to vector<1x128xf32>
    %c0_177 = arith.constant 0 : index
    %c3_178 = arith.constant 3 : index
    %c0_179 = arith.constant 0 : index
    %184 = vector.load %arg10[%c0_177, %c3_178, %c0_179] : memref<1x8x128xf32, #tpu.memory_space<vmem>>, vector<1x1x128xf32>
    %185 = vector.shape_cast %184 : vector<1x1x128xf32> to vector<1x128xf32>
    %186 = arith.maximumf %183, %185 : vector<1x128xf32>
    %c0_180 = arith.constant 0 : index
    %c1_181 = arith.constant 1 : index
    %c0_182 = arith.constant 0 : index
    %187 = vector.load %arg11[%c0_180, %c1_181, %c0_182] : memref<1x4x128xf32, #tpu.memory_space<vmem>>, vector<1x1x128xf32>
    %188 = vector.shape_cast %187 : vector<1x1x128xf32> to vector<1x128xf32>
    %189 = vector.shape_cast %186 : vector<1x128xf32> to vector<1x1x128xf32>
    tpu.vector_store %arg11[%c0_180, %c1_181, %c0_182], %189 {strides = array<i32>} : memref<1x4x128xf32, #tpu.memory_space<vmem>>, vector<1x1x128xf32>,
    %c0_183 = arith.constant 0 : index
    %c4_184 = arith.constant 4 : index
    %c0_185 = arith.constant 0 : index
    %190 = vector.load %arg10[%c0_183, %c4_184, %c0_185] : memref<1x8x128xf32, #tpu.memory_space<vmem>>, vector<1x1x128xf32>
    %191 = vector.shape_cast %190 : vector<1x1x128xf32> to vector<1x128xf32>
    %c0_186 = arith.constant 0 : index
    %c5_187 = arith.constant 5 : index
    %c0_188 = arith.constant 0 : index
    %192 = vector.load %arg10[%c0_186, %c5_187, %c0_188] : memref<1x8x128xf32, #tpu.memory_space<vmem>>, vector<1x1x128xf32>
    %193 = vector.shape_cast %192 : vector<1x1x128xf32> to vector<1x128xf32>
    %194 = arith.maximumf %191, %193 : vector<1x128xf32>
    %c0_189 = arith.constant 0 : index
    %c2_190 = arith.constant 2 : index
    %c0_191 = arith.constant 0 : index
    %195 = vector.load %arg11[%c0_189, %c2_190, %c0_191] : memref<1x4x128xf32, #tpu.memory_space<vmem>>, vector<1x1x128xf32>
    %196 = vector.shape_cast %195 : vector<1x1x128xf32> to vector<1x128xf32>
    %197 = vector.shape_cast %194 : vector<1x128xf32> to vector<1x1x128xf32>
    tpu.vector_store %arg11[%c0_189, %c2_190, %c0_191], %197 {strides = array<i32>} : memref<1x4x128xf32, #tpu.memory_space<vmem>>, vector<1x1x128xf32>,
    %c0_192 = arith.constant 0 : index
    %c6_193 = arith.constant 6 : index
    %c0_194 = arith.constant 0 : index
    %198 = vector.load %arg10[%c0_192, %c6_193, %c0_194] : memref<1x8x128xf32, #tpu.memory_space<vmem>>, vector<1x1x128xf32>
    %199 = vector.shape_cast %198 : vector<1x1x128xf32> to vector<1x128xf32>
    %c0_195 = arith.constant 0 : index
    %c7_196 = arith.constant 7 : index
    %c0_197 = arith.constant 0 : index
    %200 = vector.load %arg10[%c0_195, %c7_196, %c0_197] : memref<1x8x128xf32, #tpu.memory_space<vmem>>, vector<1x1x128xf32>
    %201 = vector.shape_cast %200 : vector<1x1x128xf32> to vector<1x128xf32>
    %202 = arith.maximumf %199, %201 : vector<1x128xf32>
    %c0_198 = arith.constant 0 : index
    %c3_199 = arith.constant 3 : index
    %c0_200 = arith.constant 0 : index
    %203 = vector.load %arg11[%c0_198, %c3_199, %c0_200] : memref<1x4x128xf32, #tpu.memory_space<vmem>>, vector<1x1x128xf32>
    %204 = vector.shape_cast %203 : vector<1x1x128xf32> to vector<1x128xf32>
    %205 = vector.shape_cast %202 : vector<1x128xf32> to vector<1x1x128xf32>
    tpu.vector_store %arg11[%c0_198, %c3_199, %c0_200], %205 {strides = array<i32>} : memref<1x4x128xf32, #tpu.memory_space<vmem>>, vector<1x1x128xf32>,
    %c0_201 = arith.constant 0 : index
    %c0_202 = arith.constant 0 : index
    %c0_203 = arith.constant 0 : index
    %206 = vector.load %arg11[%c0_201, %c0_202, %c0_203] : memref<1x4x128xf32, #tpu.memory_space<vmem>>, vector<1x1x128xf32>
    %207 = vector.shape_cast %206 : vector<1x1x128xf32> to vector<1x128xf32>
    %c0_204 = arith.constant 0 : index
    %c0_205 = arith.constant 0 : index
    %c0_206 = arith.constant 0 : index
    %208 = vector.load %arg4[%c0_204, %c0_205, %c0_206] : memref<4x128x128xf32, #tpu.memory_space<vmem>>, vector<1x128x128xf32>
    %209 = vector.shape_cast %208 : vector<1x128x128xf32> to vector<128x128xf32>
    %cst_207 = arith.constant dense<0.000000e+00> : vector<1x128xf32>
    %210 = tpu.matmul %207, %209, %cst_207 {dimension_numbers = #tpu.dot_dimension_numbers<[1], [0], [0], [1], [0, 0, 1, 1], [], []>} : vector<1x128xf32>, vector<128x128xf32>, vector<1x128xf32> -> vector<1x128xf32>
    %c0_208 = arith.constant 0 : index
    %c1_209 = arith.constant 1 : index
    %c0_210 = arith.constant 0 : index
    %211 = vector.load %arg11[%c0_208, %c1_209, %c0_210] : memref<1x4x128xf32, #tpu.memory_space<vmem>>, vector<1x1x128xf32>
    %212 = vector.shape_cast %211 : vector<1x1x128xf32> to vector<1x128xf32>
    %c1_211 = arith.constant 1 : index
    %c0_212 = arith.constant 0 : index
    %c0_213 = arith.constant 0 : index
    %213 = vector.load %arg4[%c1_211, %c0_212, %c0_213] : memref<4x128x128xf32, #tpu.memory_space<vmem>>, vector<1x128x128xf32>
    %214 = vector.shape_cast %213 : vector<1x128x128xf32> to vector<128x128xf32>
    %cst_214 = arith.constant dense<0.000000e+00> : vector<1x128xf32>
    %215 = tpu.matmul %212, %214, %cst_214 {dimension_numbers = #tpu.dot_dimension_numbers<[1], [0], [0], [1], [0, 0, 1, 1], [], []>} : vector<1x128xf32>, vector<128x128xf32>, vector<1x128xf32> -> vector<1x128xf32>
    %216 = arith.addf %210, %215 : vector<1x128xf32>
    %c0_215 = arith.constant 0 : index
    %c2_216 = arith.constant 2 : index
    %c0_217 = arith.constant 0 : index
    %217 = vector.load %arg11[%c0_215, %c2_216, %c0_217] : memref<1x4x128xf32, #tpu.memory_space<vmem>>, vector<1x1x128xf32>
    %218 = vector.shape_cast %217 : vector<1x1x128xf32> to vector<1x128xf32>
    %c2_218 = arith.constant 2 : index
    %c0_219 = arith.constant 0 : index
    %c0_220 = arith.constant 0 : index
    %219 = vector.load %arg4[%c2_218, %c0_219, %c0_220] : memref<4x128x128xf32, #tpu.memory_space<vmem>>, vector<1x128x128xf32>
    %220 = vector.shape_cast %219 : vector<1x128x128xf32> to vector<128x128xf32>
    %cst_221 = arith.constant dense<0.000000e+00> : vector<1x128xf32>
    %221 = tpu.matmul %218, %220, %cst_221 {dimension_numbers = #tpu.dot_dimension_numbers<[1], [0], [0], [1], [0, 0, 1, 1], [], []>} : vector<1x128xf32>, vector<128x128xf32>, vector<1x128xf32> -> vector<1x128xf32>
    %222 = arith.addf %216, %221 : vector<1x128xf32>
    %c0_222 = arith.constant 0 : index
    %c3_223 = arith.constant 3 : index
    %c0_224 = arith.constant 0 : index
    %223 = vector.load %arg11[%c0_222, %c3_223, %c0_224] : memref<1x4x128xf32, #tpu.memory_space<vmem>>, vector<1x1x128xf32>
    %224 = vector.shape_cast %223 : vector<1x1x128xf32> to vector<1x128xf32>
    %c3_225 = arith.constant 3 : index
    %c0_226 = arith.constant 0 : index
    %c0_227 = arith.constant 0 : index
    %225 = vector.load %arg4[%c3_225, %c0_226, %c0_227] : memref<4x128x128xf32, #tpu.memory_space<vmem>>, vector<1x128x128xf32>
    %226 = vector.shape_cast %225 : vector<1x128x128xf32> to vector<128x128xf32>
    %cst_228 = arith.constant dense<0.000000e+00> : vector<1x128xf32>
    %227 = tpu.matmul %224, %226, %cst_228 {dimension_numbers = #tpu.dot_dimension_numbers<[1], [0], [0], [1], [0, 0, 1, 1], [], []>} : vector<1x128xf32>, vector<128x128xf32>, vector<1x128xf32> -> vector<1x128xf32>
    %228 = arith.addf %222, %227 : vector<1x128xf32>
    %c2_229 = arith.constant 2 : index
    %c0_230 = arith.constant 0 : index
    %229 = vector.load %arg6[%c2_229, %c0_230] : memref<5x128xf32, #tpu.memory_space<vmem>>, vector<1x128xf32>
    %230 = arith.addf %228, %229 : vector<1x128xf32>
    %cst_231 = arith.constant 0.000000e+00 : f32
    %231 = vector.broadcast %cst_231 : f32 to vector<1x128xf32>
    %232 = arith.maximumf %230, %231 : vector<1x128xf32>
    %c0_232 = arith.constant 0 : index
    %c0_233 = arith.constant 0 : index
    %c0_234 = arith.constant 0 : index
    %233 = vector.load %arg5[%c0_232, %c0_233, %c0_234] : memref<2x128x128xf32, #tpu.memory_space<vmem>>, vector<1x128x128xf32>
    %234 = vector.shape_cast %233 : vector<1x128x128xf32> to vector<128x128xf32>
    %cst_235 = arith.constant dense<0.000000e+00> : vector<1x128xf32>
    %235 = tpu.matmul %232, %234, %cst_235 {dimension_numbers = #tpu.dot_dimension_numbers<[1], [0], [0], [1], [0, 0, 1, 1], [], []>} : vector<1x128xf32>, vector<128x128xf32>, vector<1x128xf32> -> vector<1x128xf32>
    %c3_236 = arith.constant 3 : index
    %c0_237 = arith.constant 0 : index
    %236 = vector.load %arg6[%c3_236, %c0_237] : memref<5x128xf32, #tpu.memory_space<vmem>>, vector<1x128xf32>
    %237 = arith.addf %235, %236 : vector<1x128xf32>
    %cst_238 = arith.constant 0.000000e+00 : f32
    %238 = vector.broadcast %cst_238 : f32 to vector<1x128xf32>
    %239 = arith.maximumf %237, %238 : vector<1x128xf32>
    %c1_239 = arith.constant 1 : index
    %c0_240 = arith.constant 0 : index
    %c0_241 = arith.constant 0 : index
    %240 = vector.load %arg5[%c1_239, %c0_240, %c0_241] : memref<2x128x128xf32, #tpu.memory_space<vmem>>, vector<1x128x128xf32>
    %241 = vector.shape_cast %240 : vector<1x128x128xf32> to vector<128x128xf32>
    %cst_242 = arith.constant dense<0.000000e+00> : vector<1x128xf32>
    %242 = tpu.matmul %239, %241, %cst_242 {dimension_numbers = #tpu.dot_dimension_numbers<[1], [0], [0], [1], [0, 0, 1, 1], [], []>} : vector<1x128xf32>, vector<128x128xf32>, vector<1x128xf32> -> vector<1x128xf32>
    %c4_243 = arith.constant 4 : index
    %c0_244 = arith.constant 0 : index
    %243 = vector.load %arg6[%c4_243, %c0_244] : memref<5x128xf32, #tpu.memory_space<vmem>>, vector<1x128xf32>
    %244 = arith.addf %242, %243 : vector<1x128xf32>
    %c0_245 = arith.constant 0 : index
    %c0_246 = arith.constant 0 : index
    %c0_247 = arith.constant 0 : index
    %245 = vector.load %arg7[%c0_245, %c0_246, %c0_247] : memref<1x1x128xf32, #tpu.memory_space<vmem>>, vector<1x1x128xf32>
    %246 = vector.shape_cast %245 : vector<1x1x128xf32> to vector<1x128xf32>
    %247 = vector.shape_cast %244 : vector<1x128xf32> to vector<1x1x128xf32>
    tpu.vector_store %arg7[%c0_245, %c0_246, %c0_247], %247 {strides = array<i32>} : memref<1x1x128xf32, #tpu.memory_space<vmem>>, vector<1x1x128xf32>,
    return
  }
  func.func @transform_0(%arg0: i32) -> (i32, i32, i32) {
    %c0_i32 = arith.constant 0 : i32
    %c0_i32_0 = arith.constant 0 : i32
    %c0_i32_1 = arith.constant 0 : i32
    return %arg0, %c0_i32, %c0_i32_0 : i32, i32, i32
  }
  func.func @transform_1(%arg0: i32) -> (i32, i32, i32) {
    %c0_i32 = arith.constant 0 : i32
    %c0_i32_0 = arith.constant 0 : i32
    %c0_i32_1 = arith.constant 0 : i32
    %c0_i32_2 = arith.constant 0 : i32
    return %c0_i32, %c0_i32_0, %c0_i32_1 : i32, i32, i32
  }
  func.func @transform_2(%arg0: i32) -> (i32, i32, i32) {
    %c0_i32 = arith.constant 0 : i32
    %c0_i32_0 = arith.constant 0 : i32
    %c0_i32_1 = arith.constant 0 : i32
    %c0_i32_2 = arith.constant 0 : i32
    return %c0_i32, %c0_i32_0, %c0_i32_1 : i32, i32, i32
  }
  func.func @transform_3(%arg0: i32) -> (i32, i32, i32) {
    %c0_i32 = arith.constant 0 : i32
    %c0_i32_0 = arith.constant 0 : i32
    %c0_i32_1 = arith.constant 0 : i32
    %c0_i32_2 = arith.constant 0 : i32
    return %c0_i32, %c0_i32_0, %c0_i32_1 : i32, i32, i32
  }
  func.func @transform_4(%arg0: i32) -> (i32, i32, i32) {
    %c0_i32 = arith.constant 0 : i32
    %c0_i32_0 = arith.constant 0 : i32
    %c0_i32_1 = arith.constant 0 : i32
    %c0_i32_2 = arith.constant 0 : i32
    return %c0_i32, %c0_i32_0, %c0_i32_1 : i32, i32, i32
  }
  func.func @transform_5(%arg0: i32) -> (i32, i32) {
    %c0_i32 = arith.constant 0 : i32
    %c0_i32_0 = arith.constant 0 : i32
    %c0_i32_1 = arith.constant 0 : i32
    return %c0_i32, %c0_i32_0 : i32, i32
  }
  func.func @transform_6(%arg0: i32) -> (i32, i32, i32) {
    %c0_i32 = arith.constant 0 : i32
    %c0_i32_0 = arith.constant 0 : i32
    %c0_i32_1 = arith.constant 0 : i32
    return %arg0, %c0_i32, %c0_i32_0 : i32, i32, i32
  }
}

</mosaic_0001>

<bundles_post_ra>
// kernel: convnet_forward.1
= control target key start
LH: loop header
LB: loop body
LE: loop exit
PB: predicated region body
PF: predicated region fallthrough
CT: control target
= control target key end

     0   :  { %11 = vsyncpa [#allocation7], 0  ;;  %s3579_s0 = inlined_call_operand.vmem [shape: f32[2,28,28], index: 0, kind: input, shape index: {}]   ;;  %s3580_s1 = inlined_call_operand.hbm [shape: f32[5,28,256], index: 1, kind: input, shape index: {}]   ;;  %s3581_s2 = inlined_call_operand.hbm [shape: f32[5,128,256], index: 2, kind: input, shape index: {}]   ;;  %s3582_s3 = inlined_call_operand.hbm [shape: f32[4,128,128], index: 3, kind: input, shape index: {}]   ;;  %s3583_s4 = inlined_call_operand.hbm [shape: f32[2,128,128], index: 4, kind: input, shape index: {}]   ;;  %s3584_s5 = inlined_call_operand.vmem [shape: f32[5,128], index: 5, kind: input, shape index: {}]   ;;  %s3585_s6 = inlined_call_operand.hbm [shape: f32[2,1,128], index: 6, kind: output, shape index: {}]  }
   0x1   :  { %12 = vsyncpa [#allocation10], 0 }
   0x2   :  { %13 = vsyncpa [#allocation13], 0 }
   0x3   :  { %14 = vsyncpa [#allocation8], 0 }
   0x4   :  { %16 = vsyncpa [#allocation8 + $0x1], 0  ;;  %s3206_s21 = smov 0   ;;  %s3208_s22 = smov 0  }
   0x5   :  { %s3210_s23 = smov 0   ;;  %s3212_s24 = smov 0  }
   0x6 LB: > { %3590 = sst [smem:[#allocation19_spill]] %s3152_s23  ;;  %s3227_s25 = sadd.s32 4294967295, %s3156_s24   ;;  %s3156_s24 = sphi %s3212_s24, %s3612_s24   ;;  %s3152_s23 = sphi %s3210_s23, %s3609_s23   ;;  %s3148_s22 = sphi %s3208_s22, %s3611_s22   ;;  %s3144_s21 = sphi %s3206_s21, %s3610_s21  }
   0x7   : > { %s2139_s26 = sadd.s32 4294967294, %s3156_s24   ;;  %s3231_s27 = sadd.s32 1, %s3156_s24  }
   0x8   : > { %s160_s28 = sadd.s32 1, %s3152_s23  ;;  %s157_s29 = ssub.s32 %s3156_s24, %s3231_s27 }
   0x9   : > { %p170_p0 = scmp.ne.s32.totalorder %s3152_s23, %s3148_s22  ;;  %p158_p1 = scmp.eq.s32.totalorder %s157_s29, 0 }
   0xa   : > { %p171_p2 = scmp.eq.s32.totalorder %s3227_s25, 1  ;;  %p176_p3 = scmp.ne.s32.totalorder %s3148_s22, %s3144_s21 }
   0xb   : > { %p177_p4 = scmp.eq.s32.totalorder %s2139_s26, 1  ;;  %p2140_p7 = scmp.ge.s32.totalorder %s3156_s24, 1 }
   0xc   : > { %s3242_s30 = scalar_select %p158_p1, %s3152_s23, %s160_s28  }
   0xd   : > { %p3244_p5 = por %p171_p2, %p170_p0  ;;  %p3248_p6 = por %p177_p4, %p176_p3 }
   0xe   : > { %3591 = sst [smem:[#allocation20_spill]] %s3242_s30  ;;  %p184_p8 = scmp.lt.s32.totalorder %s3156_s24, 3 }
   0xf   : > { %s3592_s7 = scalar_select %p3244_p5, 1, 0 }
  0x10   : > { %s3593_s8 = scalar_select %p3248_p6, 1, 0 }
  0x11   : > { %p3586_p9 = scmp.eq.s32.totalorder %s3227_s25, 0  ;;  %p3255_p10 = pnand %p2140_p7, %p184_p8 }
  0x12   : > { %s3158_s10 = smov [#allocation9]   ;;  %s3159_s13 = smov [#allocation6]  }
  0x13   : > { %s3594_s9 = scalar_select %p3255_p10, 1, 0 }
  0x14   : > { %p2900_p11 = pneg %p3255_p10  ;;  %s209_s11 = sshll.u32 %s3158_s10, 4  ;;  %s3261_s11 = int_to_ptr.vmem [resolvable:$true] %s209_s11 }
  0x15   : > { %s196_s14 = sshll.u32 %s3159_s13, 4  ;;  %s3160_s15 = smov [#allocation11]   ;;  %s3269_s14 = int_to_ptr.vmem [resolvable:$true] %s196_s14 }
  0x16   : > { %p3265_p12 = pnand %p3586_p9, %p2900_p11  ;;  %s3271_s16 = sshll.u32 %s3160_s15, 4  ;;  %s223_s16 = int_to_ptr.vmem [resolvable:$true] %s3271_s16 }
  0x17   : > { %s2970_s19 = scalar_lea.hbm %s3581_s2, 20480 }
  0x18   : > { %p2971_p13 = scmp.ne.s32.totalorder %s3581_s2, %s2970_s19  ;;  %p3281_p0 = pneg %p3265_p12 }
  0x19   : > { %p2977_p3 = scmp.lt.u32.totalorder %s2970_s19, %s3581_s2 }
  0x1a   : > { %p2973_p1 = pnand %p3281_p0, %p2971_p13 }
  0x1c   : > { %p2974_p2 = pneg %p2973_p1 }
  0x1e   : > { %p2979_p4 = pnand %p2977_p3, %p2974_p2 }
  0x20   : > { %2982 = shalt.err (!%p2979_p4)
}
  0x21   : > { %s2983_s13 = scalar_lea.vmem %s3261_s11, 20480  ;;  %p2991_p9 = scmp.lt.s32.totalorder %s3261_s11, %s3261_s11 }
  0x22   : > { %p2984_p7 = scmp.ne.s32.totalorder %s3261_s11, %s2983_s13  ;;  %p2992_p6 = scmp.lt.s32.totalorder %s2983_s13, %s2983_s13 }
  0x24   : > { %p2986_p8 = pnand %p2984_p7, %p3281_p0  ;;  %p2993_p13 = por %p2992_p6, %p2991_p9 }
  0x26   : > { %p2987_p11 = pneg %p2986_p8 }
  0x28   : > { %p2994_p1 = pnand %p2993_p13, %p2987_p11 }
  0x2a   : > { %2997 = shalt.err (!%p2994_p1)
}
  0x2b   : > { %s3161_s15 = smov 256   ;;  %s3162_s17 = smov 16  }
  0x2c   : > { %2906 = dma.hbm_to_vmem [thread:$0]  (!%p3265_p12), %s3581_s2, 20480, %s3261_s11, [#allocation10], %s3161_s15, %s3161_s15, %s3162_s17  }
  0x2d   : > { %s2998_s29 = scalar_lea.hbm %s3580_s1, 5120 }
  0x2e   : > { %p2999_p6 = scmp.ne.s32.totalorder %s3580_s1, %s2998_s29  ;;  %p3005_p3 = scmp.lt.u32.totalorder %s2998_s29, %s3580_s1 }
  0x30   : > { %p3001_p9 = pnand %p2999_p6, %p3281_p0 }
  0x32   : > { %p3002_p2 = pneg %p3001_p9 }
  0x34   : > { %p3007_p4 = pnand %p3005_p3, %p3002_p2 }
  0x36   : > { %3010 = shalt.err (!%p3007_p4)
}
  0x37   : > { %s3011_s11 = scalar_lea.vmem %s3269_s14, 5120  ;;  %p3019_p13 = scmp.lt.s32.totalorder %s3269_s14, %s3269_s14 }
  0x38   : > { %p3012_p7 = scmp.ne.s32.totalorder %s3269_s14, %s3011_s11  ;;  %p3020_p1 = scmp.lt.s32.totalorder %s3011_s11, %s3011_s11 }
  0x3a   : > { %p3014_p8 = pnand %p3012_p7, %p3281_p0  ;;  %p3021_p6 = por %p3020_p1, %p3019_p13 }
  0x3c   : > { %p3015_p11 = pneg %p3014_p8 }
  0x3e   : > { %p3022_p9 = pnand %p3021_p6, %p3015_p11 }
  0x40   : > { %3025 = shalt.err (!%p3022_p9)
}
  0x41   : > { %2903 = dma.hbm_to_vmem [thread:$0]  (!%p3265_p12), %s3580_s1, 5120, %s3269_s14, [#allocation7], %s3161_s15, %s3161_s15, %s3162_s17  }
  0x42   : > { %s3026_s20 = scalar_lea.hbm %s3582_s3, 8192 }
  0x43   : > { %p3027_p2 = scmp.ne.s32.totalorder %s3582_s3, %s3026_s20  ;;  %p3033_p7 = scmp.lt.u32.totalorder %s3026_s20, %s3582_s3 }
  0x45   : > { %p3029_p3 = pnand %p3027_p2, %p3281_p0 }
  0x47   : > { %p3030_p4 = pneg %p3029_p3 }
  0x49   : > { %p3035_p8 = pnand %p3033_p7, %p3030_p4 }
  0x4b   : > { %3038 = shalt.err (!%p3035_p8)
}
  0x4c   : > { %s3039_s11 = scalar_lea.vmem %s223_s16, 8192  ;;  %p3047_p6 = scmp.lt.s32.totalorder %s223_s16, %s223_s16 }
  0x4d   : > { %p3040_p11 = scmp.ne.s32.totalorder %s223_s16, %s3039_s11  ;;  %p3048_p9 = scmp.lt.s32.totalorder %s3039_s11, %s3039_s11 }
  0x4f   : > { %p3042_p13 = pnand %p3040_p11, %p3281_p0  ;;  %p3049_p5 = por %p3048_p9, %p3047_p6 }
  0x51   : > { %p3043_p1 = pneg %p3042_p13 }
  0x53   : > { %p3050_p10 = pnand %p3049_p5, %p3043_p1 }
  0x55   : > { %3053 = shalt.err (!%p3050_p10)
}
  0x56   : > { %s3163_s14 = smov 128   ;;  %s3164_s15 = smov 8  }
  0x57   : > { %2909 = dma.hbm_to_vmem [thread:$0]  (!%p3265_p12), %s3582_s3, 8192, %s223_s16, [#allocation10], %s3163_s14, %s3163_s14, %s3164_s15  }
  0x58   : > { %s3165_s30 = smov [#allocation12]   ;;  %s3054_s26 = scalar_lea.hbm %s3583_s4, 4096 }
  0x59   : > { %s235_s18 = sshll.u32 %s3165_s30, 4  ;;  %p3055_p5 = scmp.ne.s32.totalorder %s3583_s4, %s3054_s26  ;;  %s236_s18 = int_to_ptr.vmem [resolvable:$true] %s235_s18 }
  0x5a   : > { %p3061_p3 = scmp.lt.u32.totalorder %s3054_s26, %s3583_s4 }
  0x5b   : > { %p3057_p10 = pnand %p3055_p5, %p3281_p0 }
  0x5d   : > { %p3058_p2 = pneg %p3057_p10 }
  0x5f   : > { %p3063_p4 = pnand %p3061_p3, %p3058_p2 }
  0x61   : > { %3066 = shalt.err (!%p3063_p4)
}
  0x62   : > { %s3067_s16 = scalar_lea.vmem %s236_s18, 4096  ;;  %p3075_p13 = scmp.lt.s32.totalorder %s236_s18, %s236_s18 }
  0x63   : > { %p3068_p7 = scmp.ne.s32.totalorder %s236_s18, %s3067_s16  ;;  %p3076_p1 = scmp.lt.s32.totalorder %s3067_s16, %s3067_s16 }
  0x65   : > { %p3070_p8 = pnand %p3068_p7, %p3281_p0  ;;  %p3077_p6 = por %p3076_p1, %p3075_p13 }
  0x67   : > { %p3071_p11 = pneg %p3070_p8 }
  0x69   : > { %p3078_p9 = pnand %p3077_p6, %p3071_p11 }
  0x6b   : > { %3081 = shalt.err (!%p3078_p9)
}
  0x6c   : > { %2912 = dma.hbm_to_vmem [thread:$0]  (!%p3265_p12), %s3583_s4, 4096, %s236_s18, [#allocation13], %s3163_s14, %s3163_s14, %s3164_s15  }
  0x6d   : > { %p3597_p5 = scmp.ne.s32.totalorder %s3594_s9, 0 }
  0x6e   : > { %p3598_p10 = scmp.eq.s32.totalorder (!%p3597_p5), %s3227_s25, 0 }
  0x6f   : > { %262 = sbr.rel (%p3597_p5) target bundleno = 1546 (0x60a), region = 44 }
  0x76   : > { %3127 = dma.done.wait (%p3598_p10), [#allocation7], 5120   ;;  %p3599_p0 = pmov %p3598_p10 }
  0x78   : > { %3129 = vsyncadd (%p3599_p0), [#allocation7], 4294962176  ;;  %p3600_p2 = pmov %p3599_p0 }
  0x79   : > { %p3601_p3 = pmov %p3599_p0 }
  0x7a   : > { %3131 = dma.done.wait (%p3600_p2), [#allocation10], 28672  }
  0x7b   : > { %3133 = vsyncadd (%p3601_p3), [#allocation10], 4294938624  ;;  %p3602_p4 = pmov %p3599_p0 }
  0x7c   : > { %p3603_p12 = pmov %p3599_p0 }
  0x7d   : > { %3135 = dma.done.wait (%p3602_p4), [#allocation13], 4096  }
  0x7e   : > { %3137 = vsyncadd (%p3603_p12), [#allocation13], 4294963200  ;;  %v3166_v0 = vmov 0.0   ;;  %p303_p7 = scmp.lt.s32.totalorder %s3227_s25, 1  ;;  %vm341_vm0 = vcmask 1043456   ;;  %v312_v1 = vld [vmem:[#allocation6 + $0x8] sm:$0xff] }
  0x7f   : > { %510 = vmatprep.mubr.f32.mxu0 %v3166_v0  ;;  %412 = vmatprep.mubr.f32.mxu1 %v3166_v0  ;;  %v314_v2 = vld [vmem:[#allocation6 + $0x18] sm:$0xff]  ;;  %v311_v3 = vld [vmem:[#allocation6] sm:$0xff]  ;;  %v313_v5 = vld [vmem:[#allocation6 + $0x10] sm:$0xff]  ;;  %vm3167_vm1 = vmmov 1   ;;  %vm331_vm3 = vcmask 228352   ;;  %vm3169_vm4 = vmmov 0  }
  0x80   : > { %s304_s9 = scalar_select %p303_p7, %s3227_s25, 1  ;;  %v2506_v4 = vpack.c.bf16 %v314_v2, %v312_v1  ;;  %v316_v6 = vld [vmem:[#allocation6 + $0x28] sm:$0xff]  ;;  %v318_v7 = vld [vmem:[#allocation6 + $0x38] sm:$0xf]  ;;  %v2508_v8 = vpack.c.bf16 %v313_v5, %v311_v3  ;;  %vm3380_vm2 = vmpackc.low %vm341_vm0, %vm3167_vm1 }
  0x81   : > { %v2510_v10 = vpack.c.bf16 %v318_v7, %v316_v6  ;;  %v315_v11 = vld [vmem:[#allocation6 + $0x20] sm:$0xff]  ;;  %v317_v12 = vld [vmem:[#allocation6 + $0x30] sm:$0xf]  ;;  %v534_v13 = vld [vmem:[#allocation6 + $0x88] sm:$0xff]  ;;  %s301_s11 = sand.u32 1, %s3148_s22   ;;  %s2180_s23 = sshll.u32 %s3227_s25, 4 }
  0x82   : > { %s2183_s12 = sshll.u32 %s304_s9, 5  ;;  %2507 = vmatprep.subr.bf16.mxu0 %v2506_v4  ;;  %v536_v14 = vld [vmem:[#allocation6 + $0x98] sm:$0xff]  ;;  %v2513_v15 = vpack.c.bf16 %v317_v12, %v315_v11  ;;  %v533_v17 = vld [vmem:[#allocation6 + $0x80] sm:$0xff]  ;;  %v535_v18 = vld [vmem:[#allocation6 + $0x90] sm:$0xff]  ;;  %s302_s9 = scalar_lea.vmem [#allocation14], %s301_s11 }
  0x83   : > { %2509 = vmatpush1.bf16.msra.mxu0 %v2508_v8  ;;  %s3389_s15 = scalar_lea.vmem %s3579_s0, %s2183_s12  ;;  %v2516_v16 = vpack.c.bf16 %v536_v14, %v534_v13  ;;  %v538_v19 = vld [vmem:[#allocation6 + $0xa8] sm:$0xff]  ;;  %v540_v20 = vld [vmem:[#allocation6 + $0xb8] sm:$0xf]  ;;  %v2518_v22 = vpack.c.bf16 %v535_v18, %v533_v17  ;;  %v537_v24 = vld [vmem:[#allocation6 + $0xa0] sm:$0xff]  ;;  %s2043_s12 = sshll.u32 %s302_s9, 4  ;;  %s3539_s12 = int_to_ptr.vmem [resolvable:$true] %s2043_s12 }
  0x84   : > { %2512 = vmatprep.subr.msk.bf16.mxu0 %vm3380_vm2, %v2510_v10  ;;  %v308_v21 = vld [vmem:[%s3389_s15] sm:$0xff]  ;;  %v2520_v23 = vpack.c.bf16 %v540_v20, %v538_v19  ;;  %v539_v25 = vld [vmem:[#allocation6 + $0xb0] sm:$0xf]  ;;  %v650_v26 = vld [vmem:[#allocation6 + $0xc8] sm:$0xff]  ;;  %s2031_s30 = scalar_lea.sflag [#allocation8], %s301_s11  ;;  %s3082_s18 = scalar_lea.vmem %s3539_s12, 16 }
  0x85   : > { %v652_v27 = vld [vmem:[#allocation6 + $0xd8] sm:$0xff]  ;;  %v324_v28 = vld [vmem:[#allocation6 + $0x48] sm:$0xff]  ;;  %v2523_v30 = vpack.c.bf16 %v539_v25, %v537_v24  ;;  %v323_v32 = vld [vmem:[#allocation6 + $0x40] sm:$0xff]  ;;  %p3083_p8 = scmp.ne.s32.totalorder %s3539_s12, %s3082_s18  ;;  %p3606_p11 = scmp.ne.s32.totalorder %s3592_s7, 0 }
  0x86   : > { %v309_v29 = vld [vmem:[%s3389_s15 + $0x8] sm:$0xff]  ;;  %v2526_v33 = vpack.c.bf16 %v652_v27, %v650_v26  ;;  %v325_v35 = vld [vmem:[#allocation6 + $0x50] sm:$0xff]  ;;  %v328_v37 = vld [vmem:[#allocation6 + $0x68] sm:$0xff]  ;;  %s3170_s25 = smov [#allocation14]  }
  0x87   : > { %2515 = vmatpush1.bf16.msk.msra.mxu0 %vm3380_vm2, %v2513_v15  ;;  %v326_v31 = vld [vmem:[#allocation6 + $0x58] sm:$0xff]  ;;  %v2498_v36 = vpack.c.bf16 %v325_v35, %v323_v32  ;;  %v327_v39 = vld [vmem:[#allocation6 + $0x60] sm:$0xff]  ;;  %v329_v42 = vld [vmem:[#allocation6 + $0x70] sm:$0xf]  ;;  %p3084_p13 = pnand %p3083_p8, %p3606_p11  ;;  %s3086_s19 = sshll.u32 %s3170_s25, 4  ;;  %s3087_s19 = int_to_ptr.vmem [resolvable:$false] %s3086_s19 }
  0x88   : > { %2517 = vmatprep.subr.bf16.mxu0 %v2516_v16  ;;  %v2496_v34 = vpack.c.bf16 %v326_v31, %v324_v28  ;;  %v330_v38 = vld [vmem:[#allocation6 + $0x78] sm:$0xf]  ;;  %v310_v40 = vld [vmem:[%s3389_s15 + $0x10] sm:$0xff]  ;;  %v651_v44 = vld [vmem:[#allocation6 + $0xd0] sm:$0xff]  ;;  %v2503_v45 = vpack.c.bf16 %v329_v42, %v327_v39  ;;  %s3088_s20 = scalar_lea.vmem %s3087_s19, 32  ;;  %p3089_p6 = scmp.lt.s32.totalorder %s3539_s12, %s3087_s19 }
  0x89   : > { %v2500_v41 = vpack.c.bf16 %v330_v38, %v328_v37  ;;  %v649_v43 = vld [vmem:[#allocation6 + $0xc0] sm:$0xff]  ;;  %v654_v46 = vld [vmem:[#allocation6 + $0xe8] sm:$0xff]  ;;  %v656_v47 = vld [vmem:[#allocation6 + $0xf8] sm:$0xf]  ;;  %p3085_p1 = pneg %p3084_p13  ;;  %p3090_p9 = scmp.lt.s32.totalorder %s3088_s20, %s3082_s18 }
  0x8a   : > { %2160 = vmatmul.mubr.msk.f32.vlgmr.msra.gmra.mrb[0].mxu0 %vm331_vm3, %v308_v21  ;;  %2497 = vmatprep.subr.bf16.mxu1 %v2496_v34  ;;  %v529_v48 = vld [vmem:[%s3389_s15 + $0x2] sm:$0xff]  ;;  %v2528_v49 = vpack.c.bf16 %v651_v44, %v649_v43  ;;  %v2530_v50 = vpack.c.bf16 %v656_v47, %v654_v46  ;;  %v653_v51 = vld [vmem:[#allocation6 + $0xe0] sm:$0xff]  ;;  %v655_v52 = vld [vmem:[#allocation6 + $0xf0] sm:$0xf] }
  0x8b   : > { %2519 = vmatpush1.bf16.msra.mxu0 %v2518_v22  ;;  %516 = vmatprep.mubr.f32.mxu0 %v3166_v0  ;;  %v766_v53 = vld [vmem:[#allocation6 + $0x108] sm:$0xff]  ;;  %v768_v54 = vld [vmem:[#allocation6 + $0x118] sm:$0xff]  ;;  %v2533_v57 = vpack.c.bf16 %v655_v52, %v653_v51  ;;  %v765_v61 = vld [vmem:[#allocation6 + $0x100] sm:$0xff]  ;;  %p3091_p5 = por %p3090_p9, %p3089_p6 }
  0x8c   : > { %2522 = vmatprep.subr.msk.bf16.mxu0 %vm3380_vm2, %v2520_v23  ;;  %2499 = vmatpush1.bf16.msra.mxu1 %v2498_v36  ;;  %v319_v55 = vld [vmem:[%s3389_s15 + $0x1] sm:$0xff]  ;;  %v530_v56 = vld [vmem:[%s3389_s15 + $0xa] sm:$0xff]  ;;  %v2536_v58 = vpack.c.bf16 %v768_v54, %v766_v53  ;;  %v531_v60 = vld [vmem:[%s3389_s15 + $0x12] sm:$0xff] }
  0x8d   : > { %2502 = vmatprep.subr.msk.bf16.mxu1 %vm3380_vm2, %v2500_v41  ;;  %v320_v59 = vld [vmem:[%s3389_s15 + $0x9] sm:$0xff]  ;;  %v767_v62 = vld [vmem:[#allocation6 + $0x110] sm:$0xff]  ;;  %v770_v63 = vld [vmem:[#allocation6 + $0x128] sm:$0xff]  ;;  %p3092_p10 = pnand %p3091_p5, %p3085_p1 }
  0x8e   : > { %2161 = vmatmul.mubr.msk.f32.gmra.mrb[2].mxu0 %vm331_vm3, %v309_v29  ;;  %v772_v1 = vld [vmem:[#allocation6 + $0x138] sm:$0xf]  ;;  %v321_v2 = vld [vmem:[%s3389_s15 + $0x11] sm:$0xff]  ;;  %v2538_v4 = vpack.c.bf16 %v767_v62, %v765_v61  ;;  %v771_v7 = vld [vmem:[#allocation6 + $0x130] sm:$0xf] }
  0x8f   : > { %522 = vmatprep.mubr.f32.mxu0 %v3166_v0  ;;  %2525 = vmatpush1.bf16.msk.msra.mxu0 %vm3380_vm2, %v2523_v30  ;;  %v645_v3 = vld [vmem:[%s3389_s15 + $0x3] sm:$0xff]  ;;  %v2540_v5 = vpack.c.bf16 %v772_v1, %v770_v63  ;;  %v769_v6 = vld [vmem:[#allocation6 + $0x120] sm:$0xff]  ;;  %v763_v14 = vld [vmem:[%s3389_s15 + $0x14] sm:$0xff] }
  0x90   : > { %2527 = vmatprep.subr.bf16.mxu0 %v2526_v33  ;;  %2505 = vmatpush1.bf16.msk.msra.mxu1 %vm3380_vm2, %v2503_v45  ;;  %v646_v8 = vld [vmem:[%s3389_s15 + $0xb] sm:$0xff]  ;;  %v2543_v10 = vpack.c.bf16 %v771_v7, %v769_v6  ;;  %v647_v11 = vld [vmem:[%s3389_s15 + $0x13] sm:$0xff]  ;;  %v979_v18 = vld [vmem:[#allocation9 + $0x110] sm:$0xff] }
  0x91   : > { %v761_v12 = vld [vmem:[%s3389_s15 + $0x4] sm:$0xff]  ;;  %v762_v13 = vld [vmem:[%s3389_s15 + $0xc] sm:$0xff]  ;;  %v978_v9 = vld [vmem:[#allocation9 + $0x108] sm:$0xff]  ;;  %s3537_s15 = scalar_lea.hbm %s3585_s6, %s2180_s23 }
  0x92   : > { %2162 = vmatmul.mubr.msk.f32.gmra.mrb[4].mxu0 %vm331_vm3, %v310_v40  ;;  %v980_v15 = vld [vmem:[#allocation9 + $0x118] sm:$0xff]  ;;  %v977_v17 = vld [vmem:[#allocation9 + $0x100] sm:$0xff]  ;;  %v982_v20 = vld [vmem:[#allocation9 + $0x128] sm:$0xff] }
  0x93   : > { %620 = vmatprep.mubr.f32.mxu0 %v3166_v0  ;;  %2155 = vmatmul.mubr.msk.f32.vlgmr.msra.gmra.mrb[0].mxu1 %vm331_vm3, %v319_v55  ;;  %v2546_v16 = vpack.c.bf16 %v980_v15, %v978_v9  ;;  %v2548_v19 = vpack.c.bf16 %v979_v18, %v977_v17  ;;  %v984_v21 = vld [vmem:[#allocation9 + $0x138] sm:$0xff]  ;;  %v981_v23 = vld [vmem:[#allocation9 + $0x120] sm:$0xff]  ;;  %v983_v24 = vld [vmem:[#allocation9 + $0x130] sm:$0xff] }
  0x94   : > { %418 = vmatprep.mubr.f32.mxu1 %v3166_v0  ;;  %v2550_v22 = vpack.c.bf16 %v984_v21, %v982_v20  ;;  %v2552_v25 = vpack.c.bf16 %v983_v24, %v981_v23  ;;  %v986_v26 = vld [vmem:[#allocation9 + $0x148] sm:$0xff]  ;;  %v988_v27 = vld [vmem:[#allocation9 + $0x158] sm:$0xff]  ;;  %v985_v29 = vld [vmem:[#allocation9 + $0x140] sm:$0xff] }
  0x95   : > { %2547 = vmatprep.subr.bf16.mxu1 %v2546_v16  ;;  %v2554_v28 = vpack.c.bf16 %v988_v27, %v986_v26  ;;  %v987_v30 = vld [vmem:[#allocation9 + $0x150] sm:$0xff]  ;;  %v990_v32 = vld [vmem:[#allocation9 + $0x168] sm:$0xff]  ;;  %v992_v33 = vld [vmem:[#allocation9 + $0x178] sm:$0xff] }
  0x96   : > { %2165 = vmatmul.mubr.msk.f32.vlgmr.msra.gmra.mrb[0].mxu0 %vm331_vm3, %v529_v48  ;;  %2549 = vmatpush1.bf16.msra.mxu1 %v2548_v19  ;;  %v2556_v31 = vpack.c.bf16 %v987_v30, %v985_v29  ;;  %v2558_v34 = vpack.c.bf16 %v992_v33, %v990_v32  ;;  %v989_v35 = vld [vmem:[#allocation9 + $0x160] sm:$0xff]  ;;  %v991_v36 = vld [vmem:[#allocation9 + $0x170] sm:$0xff]  ;;  %v994_v38 = vld [vmem:[#allocation9 + $0x188] sm:$0xff] }
  0x97   : > { %2529 = vmatpush1.bf16.msra.mxu0 %v2528_v49  ;;  %626 = vmatprep.mubr.f32.mxu0 %v3166_v0  ;;  %v2560_v37 = vpack.c.bf16 %v991_v36, %v989_v35  ;;  %v996_v39 = vld [vmem:[#allocation9 + $0x198] sm:$0xff]  ;;  %v993_v41 = vld [vmem:[#allocation9 + $0x180] sm:$0xff]  ;;  %v995_v42 = vld [vmem:[#allocation9 + $0x190] sm:$0xff] }
  0x98   : > { %2532 = vmatprep.subr.msk.bf16.mxu0 %vm3380_vm2, %v2530_v50  ;;  %2156 = vmatmul.mubr.msk.f32.gmra.mrb[2].mxu1 %vm331_vm3, %v320_v59  ;;  %v2562_v40 = vpack.c.bf16 %v996_v39, %v994_v38  ;;  %v2564_v43 = vpack.c.bf16 %v995_v42, %v993_v41  ;;  %v998_v44 = vld [vmem:[#allocation9 + $0x1a8] sm:$0xff]  ;;  %v1000_v45 = vld [vmem:[#allocation9 + $0x1b8] sm:$0xff]  ;;  %v997_v47 = vld [vmem:[#allocation9 + $0x1a0] sm:$0xff] }
  0x99   : > { %424 = vmatprep.mubr.f32.mxu1 %v3166_v0  ;;  %2551 = vmatprep.subr.bf16.mxu1 %v2550_v22  ;;  %v2566_v46 = vpack.c.bf16 %v1000_v45, %v998_v44  ;;  %v999_v48 = vld [vmem:[#allocation9 + $0x1b0] sm:$0xff]  ;;  %v1002_v50 = vld [vmem:[#allocation9 + $0x1c8] sm:$0xff]  ;;  %v1004_v51 = vld [vmem:[#allocation9 + $0x1d8] sm:$0xff] }
  0x9a   : > { %2166 = vmatmul.mubr.msk.f32.gmra.mrb[2].mxu0 %vm331_vm3, %v530_v56  ;;  %2553 = vmatpush1.bf16.msra.mxu1 %v2552_v25  ;;  %v2568_v49 = vpack.c.bf16 %v999_v48, %v997_v47  ;;  %v1001_v52 = vld [vmem:[#allocation9 + $0x1c0] sm:$0xff]  ;;  %v2570_v53 = vpack.c.bf16 %v1004_v51, %v1002_v50  ;;  %v1003_v54 = vld [vmem:[#allocation9 + $0x1d0] sm:$0xff]  ;;  %v1006_v55 = vld [vmem:[#allocation9 + $0x1e8] sm:$0xff] }
  0x9b   : > { %632 = vmatprep.mubr.f32.mxu0 %v3166_v0  ;;  %2535 = vmatpush1.bf16.msk.msra.mxu0 %vm3380_vm2, %v2533_v57  ;;  %v1008_v56 = vld [vmem:[#allocation9 + $0x1f8] sm:$0xff]  ;;  %v2572_v57 = vpack.c.bf16 %v1003_v54, %v1001_v52  ;;  %v1005_v59 = vld [vmem:[#allocation9 + $0x1e0] sm:$0xff]  ;;  %v944_v61 = vld [vmem:[#allocation9 + $0x8] sm:$0xff] }
  0x9c   : > { %2537 = vmatprep.subr.bf16.mxu0 %v2536_v58  ;;  %2157 = vmatmul.mubr.msk.f32.gmra.mrb[4].mxu1 %vm331_vm3, %v321_v2  ;;  %v2574_v58 = vpack.c.bf16 %v1008_v56, %v1006_v55  ;;  %v946_v62 = vld [vmem:[#allocation9 + $0x18] sm:$0xff] }
  0x9d   : > { %1073 = vmatprep.mubr.f32.mxu1 %v3166_v0  ;;  %2555 = vmatprep.subr.bf16.mxu1 %v2554_v28  ;;  %v2578_v1 = vpack.c.bf16 %v946_v62, %v944_v61 }
  0x9e   : > { %2167 = vmatmul.mubr.msk.f32.gmra.mrb[4].mxu0 %vm331_vm3, %v531_v60  ;;  %2557 = vmatpush1.bf16.msra.mxu1 %v2556_v31  ;;  %v1007_v60 = vld [vmem:[#allocation9 + $0x1f0] sm:$0xff] }
  0x9f   : > { %736 = vmatprep.mubr.f32.mxu0 %v3166_v0  ;;  %2559 = vmatprep.subr.bf16.mxu1 %v2558_v34  ;;  %v2576_v63 = vpack.c.bf16 %v1007_v60, %v1005_v59 }
  0xa2   : > { %2170 = vmatmul.mubr.msk.f32.vlgmr.msra.gmra.mrb[0].mxu0 %vm331_vm3, %v645_v3  ;;  %2561 = vmatpush1.bf16.msra.mxu1 %v2560_v37 }
  0xa3   : > { %2539 = vmatpush1.bf16.msra.mxu0 %v2538_v4  ;;  %742 = vmatprep.mubr.f32.mxu0 %v3166_v0 }
  0xa4   : > { %2542 = vmatprep.subr.msk.bf16.mxu0 %vm3380_vm2, %v2540_v5  ;;  %2563 = vmatprep.subr.bf16.mxu1 %v2562_v40 }
  0xa6   : > { %2171 = vmatmul.mubr.msk.f32.gmra.mrb[2].mxu0 %vm331_vm3, %v646_v8  ;;  %2565 = vmatpush1.bf16.msra.mxu1 %v2564_v43 }
  0xa7   : > { %748 = vmatprep.mubr.f32.mxu0 %v3166_v0  ;;  %2545 = vmatpush1.bf16.msk.msra.mxu0 %vm3380_vm2, %v2543_v10 }
  0xa8   : > { %2567 = vmatprep.subr.bf16.mxu1 %v2566_v46 }
  0xaa   : > { %2172 = vmatmul.mubr.msk.f32.gmra.mrb[4].mxu0 %vm331_vm3, %v647_v11  ;;  %2569 = vmatpush1.bf16.msra.mxu1 %v2568_v49 }
  0xab   : > { %852 = vmatprep.mubr.f32.mxu0 %v3166_v0  ;;  %2571 = vmatprep.subr.bf16.mxu1 %v2570_v53 }
  0xae   : > { %2175 = vmatmul.mubr.msk.f32.vlgmr.msra.gmra.mrb[0].mxu0 %vm331_vm3, %v761_v12  ;;  %2573 = vmatpush1.bf16.msra.mxu1 %v2572_v57 }
  0xaf   : > { %858 = vmatprep.mubr.f32.mxu0 %v3166_v0  ;;  %2575 = vmatprep.subr.bf16.mxu1 %v2574_v58 }
  0xb2   : > { %2176 = vmatmul.mubr.msk.f32.gmra.mrb[2].mxu0 %vm331_vm3, %v762_v13  ;;  %2577 = vmatpush1.bf16.msra.mxu1 %v2576_v63  ;;  %v2178_v13 = vld [vmem:[%s3584_s5] ss:$0 sm:$0xff] }
  0xb3   : > { %864 = vmatprep.mubr.f32.mxu0 %v3166_v0  ;;  %2579 = vmatprep.subr.bf16.mxu1 %v2578_v1 }
  0xb6   : > { %2177 = vmatmul.mubr.msk.f32.gmra.mrb[4].mxu0 %vm331_vm3, %v763_v14 }
  0xb7   : > { %2318 = vmatprep.mubr.msk.f32.mxu0 %vm3169_vm4, %v3166_v0 }
 0x166   : > { %v414_v2 = vpop.f32.mrb[0].mxu1 }
 0x167   : > { %v416_v3 = vpop.f32.mrb[1].mxu1 }
 0x16b   : > { %v420_v4 = vpop.f32.mrb[2].mxu1 }
 0x16c   : > { %v422_v5 = vpop.f32.mrb[3].mxu1 }
 0x16f   : > { %v426_v6 = vpop.f32.mrb[4].mxu1 }
 0x170   : > { %v428_v7 = vpop.f32.mrb[5].mxu1 }
 0x181   : > { %v854_v8 = vpop.f32.mrb[0].mxu0 }
 0x182   : > { %v2850_v10 = vadd.f32 %v854_v8, %v414_v2  ;;  %v856_v11 = vpop.f32.mrb[1].mxu0 }
 0x183   : > { %v2851_v12 = vadd.f32 %v856_v11, %v416_v3  ;;  %v943_v3 = vld [vmem:[#allocation9] sm:$0xff]  ;;  %v949_v11 = vld [vmem:[#allocation9 + $0x30] sm:$0xff] }
 0x185   : > { %v877_v14 = vmax.f32 %v2850_v10, %v2851_v12  ;;  %v860_v9 = vpop.f32.mrb[2].mxu0  ;;  %v947_v10 = vld [vmem:[#allocation9 + $0x20] sm:$0xff] }
 0x186   : > { %v2852_v15 = vadd.f32 %v860_v9, %v420_v4  ;;  %v862_v16 = vpop.f32.mrb[3].mxu0  ;;  %v945_v4 = vld [vmem:[#allocation9 + $0x10] sm:$0xff]  ;;  %v1516_v9 = vld [vmem:[#allocation11 + $0x80] sm:$0xff] }
 0x187   : > { %v885_v17 = vadd.f32 %v2178_v13, %v877_v14  ;;  %v2853_v18 = vadd.f32 %v862_v16, %v422_v5  ;;  %v948_v5 = vld [vmem:[#allocation9 + $0x28] sm:$0xff]  ;;  %v954_v14 = vld [vmem:[#allocation9 + $0x58] sm:$0xff] }
 0x188   : > { %v1517_v16 = vld [vmem:[#allocation11 + $0x88] sm:$0xff] }
 0x189   : > { %v888_v19 = vmax.f32 %v885_v17, 0.0  ;;  %v878_v20 = vmax.f32 %v2852_v15, %v2853_v18  ;;  %v866_v21 = vpop.f32.mrb[4].mxu0  ;;  %v2584_v15 = vpack.c.bf16 %v949_v11, %v947_v10  ;;  %v1518_v17 = vld [vmem:[#allocation11 + $0x90] sm:$0xff]  ;;  %v1519_v18 = vld [vmem:[#allocation11 + $0x98] sm:$0xff]  ;;  %v1161_v10 = vld [vmem:[#allocation9 + $0x240] sm:$0xff] }
 0x18a   : > { %v2854_v22 = vadd.f32 %v866_v21, %v426_v6  ;;  %v868_v23 = vpop.f32.mrb[5].mxu0  ;;  %v950_v6 = vld [vmem:[#allocation9 + $0x38] sm:$0xff]  ;;  %v953_v21 = vld [vmem:[#allocation9 + $0x50] sm:$0xff] }
 0x18b   : > { %891 = vst [vmem:[#allocation2] sm:$0xff] %v888_v19  ;;  %v886_v24 = vadd.f32 %v2178_v13, %v878_v20  ;;  %v2855_v25 = vadd.f32 %v868_v23, %v428_v7  ;;  %v2580_v7 = vpack.c.bf16 %v945_v4, %v943_v3  ;;  %v2582_v8 = vpack.c.bf16 %v950_v6, %v948_v5  ;;  %v951_v20 = vld [vmem:[#allocation9 + $0x40] sm:$0xff]  ;;  %v1159_v3 = vld [vmem:[#allocation9 + $0x230] sm:$0xff]  ;;  %v1162_v5 = vld [vmem:[#allocation9 + $0x248] sm:$0xff] }
 0x18c   : > { %v2707_v23 = vpack.c.bf16 %v1517_v16, %v1516_v9  ;;  %v1164_v6 = vld [vmem:[#allocation9 + $0x258] sm:$0xff]  ;;  %v1163_v11 = vld [vmem:[#allocation9 + $0x250] sm:$0xff] }
 0x18d   : > { %v889_v26 = vmax.f32 %v886_v24, 0.0  ;;  %v879_v27 = vmax.f32 %v2854_v22, %v2855_v25  ;;  %v3168_v22 = vmov 0.0|0.0   ;;  %v956_v24 = vld [vmem:[#allocation9 + $0x68] sm:$0xff]  ;;  %v958_v25 = vld [vmem:[#allocation9 + $0x78] sm:$0xff]  ;;  %v1167_v16 = vld [vmem:[#allocation9 + $0x270] sm:$0xff] }
 0x18e   : > { %2706 = vmatprep.subr.bf16.mxu0 %v3168_v22 }
 0x18f   : > { %892 = vst [vmem:[#allocation2 + $0x8] sm:$0xff] %v889_v26  ;;  %v887_v28 = vadd.f32 %v2178_v13, %v879_v27  ;;  %v952_v13 = vld [vmem:[#allocation9 + $0x48] sm:$0xff]  ;;  %2708 = vmatpush3.bf16.msra.mxu0 %v2707_v23  ;;  %v2710_v26 = vpack.c.bf16 %v1519_v18, %v1518_v17  ;;  %v2588_v27 = vpack.c.bf16 %v953_v21, %v951_v20  ;;  %v1172_v18 = vld [vmem:[#allocation9 + $0x298] sm:$0xff]  ;;  %v1169_v21 = vld [vmem:[#allocation9 + $0x280] sm:$0xff] }
 0x190   : > { %v2586_v19 = vpack.c.bf16 %v954_v14, %v952_v13  ;;  %2709 = vmatprep.subr.bf16.mxu0 %v3168_v22  ;;  %v1168_v13 = vld [vmem:[#allocation9 + $0x278] sm:$0xff]  ;;  %v2620_v14 = vpack.c.bf16 %v1163_v11, %v1161_v10  ;;  %v1170_v17 = vld [vmem:[#allocation9 + $0x288] sm:$0xff]  ;;  %v1171_v23 = vld [vmem:[#allocation9 + $0x290] sm:$0xff] }
 0x191   : > { %v890_v29 = vmax.f32 %v887_v28, 0.0  ;;  %v2590_v28 = vpack.c.bf16 %v958_v25, %v956_v24  ;;  %v2626_v20 = vpack.c.bf16 %v1172_v18, %v1170_v17  ;;  %v1174_v24 = vld [vmem:[#allocation9 + $0x2a8] sm:$0xff]  ;;  %v1176_v25 = vld [vmem:[#allocation9 + $0x2b8] sm:$0xff]  ;;  %v1278_v10 = vld [vmem:[#allocation9 + $0x390] sm:$0xff] }
 0x192   : > { %v898_v30 = vld [vmem:[#allocation2 + $0x2] sm:$0x1]  ;;  %v899_v31 = vld [vmem:[#allocation2 + $0x3] sm:$0x1]  ;;  %v902_v32 = vld [vmem:[#allocation2 + $0x4] sm:$0x1] }
 0x193   : > { %v903_v33 = vld [vmem:[#allocation2 + $0x5] sm:$0x1]  ;;  %v906_v34 = vld [vmem:[#allocation2 + $0x6] sm:$0x1]  ;;  %v907_v35 = vld [vmem:[#allocation2 + $0x7] sm:$0x1]  ;;  %v900_v36 = vmax.f32 %v898_v30, %v899_v31  ;;  %2711 = vmatpush3.bf16.msra.mxu0 %v2710_v26  ;;  %v2628_v26 = vpack.c.bf16 %v1171_v23, %v1169_v21 }
 0x194   : > { %893 = vst [vmem:[#allocation2 + $0x10] sm:$0xff] %v890_v29  ;;  %v904_v37 = vmax.f32 %v902_v32, %v903_v33  ;;  %v908_v38 = vmax.f32 %v906_v34, %v907_v35  ;;  %v894_v39 = vld [vmem:[#allocation2] sm:$0x1]  ;;  %v895_v40 = vld [vmem:[#allocation2 + $0x1] sm:$0x1]  ;;  %v955_v29 = vld [vmem:[#allocation9 + $0x60] sm:$0xff]  ;;  %2712 = vmatprep.subr.bf16.mxu0 %v3168_v22 }
 0x195   : > { %901 = vst [vmem:[#allocation3 + $0x1] sm:$0x1] %v900_v36  ;;  %v896_v41 = vmax.f32 %v894_v39, %v895_v40  ;;  %v957_v30 = vld [vmem:[#allocation9 + $0x70] sm:$0xff]  ;;  %v960_v31 = vld [vmem:[#allocation9 + $0x88] sm:$0xff]  ;;  %v962_v32 = vld [vmem:[#allocation9 + $0x98] sm:$0xff] }
 0x196   : > { %v910_v42 = vld [vmem:[#allocation2 + $0x8] sm:$0x1]  ;;  %v911_v43 = vld [vmem:[#allocation2 + $0x9] sm:$0x1]  ;;  %v914_v44 = vld [vmem:[#allocation2 + $0xa] sm:$0x1]  ;;  %v2592_v33 = vpack.c.bf16 %v957_v30, %v955_v29  ;;  %v2594_v34 = vpack.c.bf16 %v962_v32, %v960_v31 }
 0x197   : > { %905 = vst [vmem:[#allocation3 + $0x2] sm:$0x1] %v904_v37  ;;  %909 = vst [vmem:[#allocation3 + $0x3] sm:$0x1] %v908_v38  ;;  %v915_v45 = vld [vmem:[#allocation2 + $0xb] sm:$0x1]  ;;  %v912_v48 = vmax.f32 %v910_v42, %v911_v43 }
 0x198   : > { %v918_v46 = vld [vmem:[#allocation2 + $0xc] sm:$0x1]  ;;  %v919_v47 = vld [vmem:[#allocation2 + $0xd] sm:$0x1]  ;;  %897 = vst [vmem:[#allocation3] sm:$0x1] %v896_v41  ;;  %v916_v51 = vmax.f32 %v914_v44, %v915_v45 }
 0x199   : > { %v922_v49 = vld [vmem:[#allocation2 + $0xe] sm:$0x1]  ;;  %v923_v50 = vld [vmem:[#allocation2 + $0xf] sm:$0x1]  ;;  %v920_v52 = vmax.f32 %v918_v46, %v919_v47  ;;  %913 = vst [vmem:[#allocation3 + $0x4] sm:$0x1] %v912_v48 }
 0x19a   : > { %v924_v53 = vmax.f32 %v922_v49, %v923_v50  ;;  %917 = vst [vmem:[#allocation3 + $0x5] sm:$0x1] %v916_v51  ;;  %v959_v35 = vld [vmem:[#allocation9 + $0x80] sm:$0xff]  ;;  %v961_v36 = vld [vmem:[#allocation9 + $0x90] sm:$0xff]  ;;  %v964_v37 = vld [vmem:[#allocation9 + $0xa8] sm:$0xff] }
 0x19b   : > { %v926_v54 = vld [vmem:[#allocation2 + $0x10] sm:$0x1]  ;;  %v927_v55 = vld [vmem:[#allocation2 + $0x11] sm:$0x1]  ;;  %921 = vst [vmem:[#allocation3 + $0x6] sm:$0x1] %v920_v52  ;;  %v2596_v39 = vpack.c.bf16 %v961_v36, %v959_v35 }
 0x19c   : > { %v930_v56 = vld [vmem:[#allocation2 + $0x12] sm:$0x1]  ;;  %925 = vst [vmem:[#allocation3 + $0x7] sm:$0x1] %v924_v53  ;;  %v928_v57 = vmax.f32 %v926_v54, %v927_v55  ;;  %v931_v58 = vld [vmem:[#allocation2 + $0x13] sm:$0x1] }
 0x19d   : > { %v934_v59 = vld [vmem:[#allocation2 + $0x14] sm:$0x1]  ;;  %v935_v60 = vld [vmem:[#allocation2 + $0x15] sm:$0x1]  ;;  %v932_v61 = vmax.f32 %v930_v56, %v931_v58  ;;  %v938_v63 = vld [vmem:[#allocation2 + $0x16] sm:$0x1] }
 0x19e   : > { %v936_v62 = vmax.f32 %v934_v59, %v935_v60  ;;  %929 = vst [vmem:[#allocation3 + $0x8] sm:$0x1] %v928_v57  ;;  %v939_v1 = vld [vmem:[#allocation2 + $0x17] sm:$0x1]  ;;  %v966_v38 = vld [vmem:[#allocation9 + $0xb8] sm:$0xff]  ;;  %v965_v42 = vld [vmem:[#allocation9 + $0xb0] sm:$0xff] }
 0x19f   : > { %933 = vst [vmem:[#allocation3 + $0x9] sm:$0x1] %v932_v61  ;;  %v940_v2 = vmax.f32 %v938_v63, %v939_v1  ;;  %v2598_v40 = vpack.c.bf16 %v966_v38, %v964_v37  ;;  %v963_v41 = vld [vmem:[#allocation9 + $0xa0] sm:$0xff]  ;;  %v968_v43 = vld [vmem:[#allocation9 + $0xc8] sm:$0xff]  ;;  %v970_v44 = vld [vmem:[#allocation9 + $0xd8] sm:$0xff] }
 0x1a0   : > { %937 = vst [vmem:[#allocation3 + $0xa] sm:$0x1] %v936_v62  ;;  %v2600_v45 = vpack.c.bf16 %v965_v42, %v963_v41  ;;  %v2602_v46 = vpack.c.bf16 %v970_v44, %v968_v43  ;;  %v967_v47 = vld [vmem:[#allocation9 + $0xc0] sm:$0xff]  ;;  %v969_v48 = vld [vmem:[#allocation9 + $0xd0] sm:$0xff]  ;;  %v972_v49 = vld [vmem:[#allocation9 + $0xe8] sm:$0xff] }
 0x1a1   : > { %941 = vst [vmem:[#allocation3 + $0xb] sm:$0x1] %v940_v2  ;;  %v974_v50 = vld [vmem:[#allocation9 + $0xf8] sm:$0xff]  ;;  %v2604_v51 = vpack.c.bf16 %v969_v48, %v967_v47  ;;  %v971_v53 = vld [vmem:[#allocation9 + $0xe0] sm:$0xff]  ;;  %v973_v54 = vld [vmem:[#allocation9 + $0xf0] sm:$0xff] }
 0x1a2   : > { %v2606_v52 = vpack.c.bf16 %v974_v50, %v972_v49  ;;  %v1154_v55 = vld [vmem:[#allocation9 + $0x208] sm:$0xff]  ;;  %v1156_v56 = vld [vmem:[#allocation9 + $0x218] sm:$0xff]  ;;  %v2608_v57 = vpack.c.bf16 %v973_v54, %v971_v53  ;;  %v1153_v59 = vld [vmem:[#allocation9 + $0x200] sm:$0xff] }
 0x1a3   : > { %v2610_v58 = vpack.c.bf16 %v1156_v56, %v1154_v55  ;;  %v1155_v60 = vld [vmem:[#allocation9 + $0x210] sm:$0xff]  ;;  %v1158_v61 = vld [vmem:[#allocation9 + $0x228] sm:$0xff]  ;;  %v1160_v62 = vld [vmem:[#allocation9 + $0x238] sm:$0xff] }
 0x1a4   : > { %v2612_v63 = vpack.c.bf16 %v1155_v60, %v1153_v59  ;;  %v2614_v1 = vpack.c.bf16 %v1160_v62, %v1158_v61  ;;  %v1157_v2 = vld [vmem:[#allocation9 + $0x220] sm:$0xff]  ;;  %v1175_v29 = vld [vmem:[#allocation9 + $0x2b0] sm:$0xff]  ;;  %v1178_v30 = vld [vmem:[#allocation9 + $0x2c8] sm:$0xff] }
 0x1a5   : > { %v975_v12 = vld [vmem:[#allocation3 + $0x1] sm:$0xff]  ;;  %v1180_v31 = vld [vmem:[#allocation9 + $0x2d8] sm:$0xff]  ;;  %v1179_v35 = vld [vmem:[#allocation9 + $0x2d0] sm:$0xff] }
 0x1a6   : > { %1074 = vmatmul.mubr.f32.vlgmr.msra.gmra.mrb[6].mxu1 %v975_v12  ;;  %v942_v4 = vld [vmem:[#allocation3] sm:$0xff]  ;;  %v1184_v37 = vld [vmem:[#allocation9 + $0x2f8] sm:$0xff]  ;;  %v1183_v41 = vld [vmem:[#allocation9 + $0x2f0] sm:$0xff] }
 0x1a7   : > { %2581 = vmatpush1.bf16.msra.mxu1 %v2580_v7  ;;  %1144 = vmatprep.mubr.f32.mxu1 %v3166_v0  ;;  %v2616_v7 = vpack.c.bf16 %v1159_v3, %v1157_v2  ;;  %v1166_v12 = vld [vmem:[#allocation9 + $0x268] sm:$0xff]  ;;  %v1263_v43 = vld [vmem:[#allocation9 + $0x318] sm:$0xff]  ;;  %v1262_v47 = vld [vmem:[#allocation9 + $0x310] sm:$0xff] }
 0x1a8   : > { %2583 = vmatprep.subr.bf16.mxu1 %v2582_v8  ;;  %v2618_v8 = vpack.c.bf16 %v1164_v6, %v1162_v5  ;;  %v2622_v9 = vpack.c.bf16 %v1168_v13, %v1166_v12  ;;  %v1182_v36 = vld [vmem:[#allocation9 + $0x2e8] sm:$0xff]  ;;  %v1267_v49 = vld [vmem:[#allocation9 + $0x338] sm:$0xff]  ;;  %v1266_v53 = vld [vmem:[#allocation9 + $0x330] sm:$0xff] }
 0x1a9   : > { %v1261_v42 = vld [vmem:[#allocation9 + $0x308] sm:$0xff]  ;;  %v1271_v56 = vld [vmem:[#allocation9 + $0x358] sm:$0xff]  ;;  %v1268_v59 = vld [vmem:[#allocation9 + $0x340] sm:$0xff] }
 0x1aa   : > { %v1265_v48 = vld [vmem:[#allocation9 + $0x328] sm:$0xff]  ;;  %v1270_v60 = vld [vmem:[#allocation9 + $0x350] sm:$0xff]  ;;  %v1275_v62 = vld [vmem:[#allocation9 + $0x378] sm:$0xff] }
 0x1ab   : > { %2585 = vmatpush1.bf16.msra.mxu1 %v2584_v15  ;;  %v1165_v15 = vld [vmem:[#allocation9 + $0x260] sm:$0xff]  ;;  %v1269_v55 = vld [vmem:[#allocation9 + $0x348] sm:$0xff]  ;;  %v1274_v3 = vld [vmem:[#allocation9 + $0x370] sm:$0xff] }
 0x1ac   : > { %2587 = vmatprep.subr.bf16.mxu1 %v2586_v19  ;;  %v2624_v19 = vpack.c.bf16 %v1167_v16, %v1165_v15  ;;  %v1151_v54 = vld [vmem:[#allocation3 + $0x2] sm:$0xff]  ;;  %v1279_v5 = vld [vmem:[#allocation9 + $0x398] sm:$0xff]  ;;  %v1282_v15 = vld [vmem:[#allocation9 + $0x3b0] sm:$0xff] }
 0x1ad   : > { %v1273_v61 = vld [vmem:[#allocation9 + $0x368] sm:$0xff]  ;;  %v1272_v2 = vld [vmem:[#allocation9 + $0x360] sm:$0xff]  ;;  %v1283_v12 = vld [vmem:[#allocation9 + $0x3b8] sm:$0xff] }
 0x1ae   : > { %v2656_v6 = vpack.c.bf16 %v1274_v3, %v1272_v2  ;;  %v1281_v11 = vld [vmem:[#allocation9 + $0x3a8] sm:$0xff]  ;;  %v1287_v17 = vld [vmem:[#allocation9 + $0x3d8] sm:$0xff]  ;;  %v1286_v21 = vld [vmem:[#allocation9 + $0x3d0] sm:$0xff] }
 0x1af   : > { %2589 = vmatpush1.bf16.msra.mxu1 %v2588_v27  ;;  %v2630_v27 = vpack.c.bf16 %v1176_v25, %v1174_v24  ;;  %v1285_v16 = vld [vmem:[#allocation9 + $0x3c8] sm:$0xff]  ;;  %v1291_v24 = vld [vmem:[#allocation9 + $0x3f8] sm:$0xff]  ;;  %v1389_v2 = vld [vmem:[#allocation9 + $0x4b0] sm:$0xff] }
 0x1b0   : > { %2591 = vmatprep.subr.bf16.mxu1 %v2590_v28  ;;  %v1173_v28 = vld [vmem:[#allocation9 + $0x2a0] sm:$0xff]  ;;  %v1289_v23 = vld [vmem:[#allocation9 + $0x3e8] sm:$0xff] }
 0x1b1   : > { %v2632_v32 = vpack.c.bf16 %v1175_v29, %v1173_v28  ;;  %v1290_v28 = vld [vmem:[#allocation9 + $0x3f0] sm:$0xff]  ;;  %v1368_v29 = vld [vmem:[#allocation9 + $0x408] sm:$0xff] }
 0x1b2   : > { %v1392_v3 = vld [vmem:[#allocation9 + $0x4c8] sm:$0xff] }
 0x1b3   : > { %2593 = vmatpush1.bf16.msra.mxu1 %v2592_v33  ;;  %v2634_v33 = vpack.c.bf16 %v1180_v31, %v1178_v30  ;;  %v1370_v30 = vld [vmem:[#allocation9 + $0x418] sm:$0xff] }
 0x1b4   : > { %2595 = vmatprep.subr.bf16.mxu1 %v2594_v34  ;;  %v1177_v34 = vld [vmem:[#allocation9 + $0x2c0] sm:$0xff] }
 0x1b5   : > { %v2636_v38 = vpack.c.bf16 %v1179_v35, %v1177_v34  ;;  %v1369_v34 = vld [vmem:[#allocation9 + $0x410] sm:$0xff]  ;;  %v1372_v35 = vld [vmem:[#allocation9 + $0x428] sm:$0xff] }
 0x1b7   : > { %2597 = vmatpush1.bf16.msra.mxu1 %v2596_v39  ;;  %v2638_v39 = vpack.c.bf16 %v1184_v37, %v1182_v36  ;;  %v1374_v36 = vld [vmem:[#allocation9 + $0x438] sm:$0xff] }
 0x1b8   : > { %2599 = vmatprep.subr.bf16.mxu1 %v2598_v40  ;;  %v1181_v40 = vld [vmem:[#allocation9 + $0x2e0] sm:$0xff] }
 0x1b9   : > { %v2640_v44 = vpack.c.bf16 %v1183_v41, %v1181_v40  ;;  %v1373_v40 = vld [vmem:[#allocation9 + $0x430] sm:$0xff]  ;;  %v1258_v41 = vld [vmem:[#allocation3 + $0x3] sm:$0xff] }
 0x1bb   : > { %2601 = vmatpush1.bf16.msra.mxu1 %v2600_v45  ;;  %v2642_v45 = vpack.c.bf16 %v1263_v43, %v1261_v42  ;;  %v1376_v42 = vld [vmem:[#allocation9 + $0x448] sm:$0xff]  ;;  %v1378_v43 = vld [vmem:[#allocation9 + $0x458] sm:$0xff] }
 0x1bc   : > { %2603 = vmatprep.subr.bf16.mxu1 %v2602_v46  ;;  %v1260_v46 = vld [vmem:[#allocation9 + $0x300] sm:$0xff] }
 0x1bd   : > { %v2644_v50 = vpack.c.bf16 %v1262_v47, %v1260_v46  ;;  %v1375_v46 = vld [vmem:[#allocation9 + $0x440] sm:$0xff]  ;;  %v1377_v47 = vld [vmem:[#allocation9 + $0x450] sm:$0xff] }
 0x1bf   : > { %2605 = vmatpush1.bf16.msra.mxu1 %v2604_v51  ;;  %v2646_v51 = vpack.c.bf16 %v1267_v49, %v1265_v48  ;;  %v1380_v48 = vld [vmem:[#allocation9 + $0x468] sm:$0xff]  ;;  %v1382_v49 = vld [vmem:[#allocation9 + $0x478] sm:$0xff] }
 0x1c0   : > { %2607 = vmatprep.subr.bf16.mxu1 %v2606_v52  ;;  %v1264_v52 = vld [vmem:[#allocation9 + $0x320] sm:$0xff] }
 0x1c3   : > { %2609 = vmatpush1.bf16.msra.mxu1 %v2608_v57  ;;  %v2648_v57 = vpack.c.bf16 %v1266_v53, %v1264_v52  ;;  %v1379_v52 = vld [vmem:[#allocation9 + $0x460] sm:$0xff]  ;;  %v1381_v53 = vld [vmem:[#allocation9 + $0x470] sm:$0xff] }
 0x1c4   : > { %2611 = vmatprep.subr.bf16.mxu1 %v2610_v58  ;;  %v2650_v58 = vpack.c.bf16 %v1271_v56, %v1269_v55  ;;  %v1386_v55 = vld [vmem:[#allocation9 + $0x498] sm:$0xff]  ;;  %v2688_v56 = vpack.c.bf16 %v1381_v53, %v1379_v52 }
 0x1c6   : > { %1145 = vmatmul.mubr.f32.vlgmr.msra.gmra.mrb[6].mxu1 %v942_v4  ;;  %v1277_v4 = vld [vmem:[#allocation9 + $0x388] sm:$0xff] }
 0x1c7   : > { %2613 = vmatpush1.bf16.msra.mxu1 %v2612_v63  ;;  %1249 = vmatprep.mubr.f32.mxu1 %v3166_v0  ;;  %v2652_v63 = vpack.c.bf16 %v1270_v60, %v1268_v59  ;;  %v1385_v59 = vld [vmem:[#allocation9 + $0x490] sm:$0xff]  ;;  %v1388_v60 = vld [vmem:[#allocation9 + $0x4a8] sm:$0xff] }
 0x1c8   : > { %2615 = vmatprep.subr.bf16.mxu1 %v2614_v1  ;;  %v2654_v1 = vpack.c.bf16 %v1275_v62, %v1273_v61  ;;  %v1390_v61 = vld [vmem:[#allocation9 + $0x4b8] sm:$0xff] }
 0x1cb   : > { %2617 = vmatpush1.bf16.msra.mxu1 %v2616_v7  ;;  %v2658_v7 = vpack.c.bf16 %v1279_v5, %v1277_v4  ;;  %v1394_v4 = vld [vmem:[#allocation9 + $0x4d8] sm:$0xff] }
 0x1cc   : > { %2619 = vmatprep.subr.bf16.mxu1 %v2618_v8  ;;  %v1276_v8 = vld [vmem:[#allocation9 + $0x380] sm:$0xff] }
 0x1cd   : > { %v2660_v13 = vpack.c.bf16 %v1278_v10, %v1276_v8  ;;  %v1393_v8 = vld [vmem:[#allocation9 + $0x4d0] sm:$0xff]  ;;  %v1396_v10 = vld [vmem:[#allocation9 + $0x4e8] sm:$0xff] }
 0x1cf   : > { %2621 = vmatpush1.bf16.msra.mxu1 %v2620_v14  ;;  %v2662_v14 = vpack.c.bf16 %v1283_v12, %v1281_v11  ;;  %v1398_v11 = vld [vmem:[#allocation9 + $0x4f8] sm:$0xff] }
 0x1d0   : > { %2623 = vmatprep.subr.bf16.mxu1 %v2622_v9  ;;  %v1280_v9 = vld [vmem:[#allocation9 + $0x3a0] sm:$0xff] }
 0x1d1   : > { %v2664_v18 = vpack.c.bf16 %v1282_v15, %v1280_v9  ;;  %v1397_v9 = vld [vmem:[#allocation9 + $0x4f0] sm:$0xff] }
 0x1d3   : > { %2625 = vmatpush1.bf16.msra.mxu1 %v2624_v19  ;;  %v2666_v19 = vpack.c.bf16 %v1287_v17, %v1285_v16  ;;  %v1365_v16 = vld [vmem:[#allocation3 + $0x4] sm:$0xff]  ;;  %v1520_v17 = vld [vmem:[#allocation11 + $0xa0] sm:$0xff] }
 0x1d4   : > { %2627 = vmatprep.subr.bf16.mxu1 %v2626_v20  ;;  %v1284_v20 = vld [vmem:[#allocation9 + $0x3c0] sm:$0xff] }
 0x1d5   : > { %v2668_v25 = vpack.c.bf16 %v1286_v21, %v1284_v20  ;;  %v1522_v20 = vld [vmem:[#allocation11 + $0xb0] sm:$0xff]  ;;  %v1523_v21 = vld [vmem:[#allocation11 + $0xb8] sm:$0xff] }
 0x1d7   : > { %2629 = vmatpush1.bf16.msra.mxu1 %v2628_v26  ;;  %v2670_v26 = vpack.c.bf16 %v1291_v24, %v1289_v23  ;;  %v2716_v23 = vpack.c.bf16 %v1523_v21, %v1522_v20  ;;  %v1524_v24 = vld [vmem:[#allocation11 + $0xc0] sm:$0xff]  ;;  %v1677_v20 = vld [vmem:[#allocation11 + $0x118] sm:$0xff] }
 0x1d8   : > { %2631 = vmatprep.subr.bf16.mxu1 %v2630_v27  ;;  %v1288_v27 = vld [vmem:[#allocation9 + $0x3e0] sm:$0xff] }
 0x1d9   : > { %v2672_v31 = vpack.c.bf16 %v1290_v28, %v1288_v27  ;;  %v1526_v27 = vld [vmem:[#allocation11 + $0xd0] sm:$0xff]  ;;  %v1527_v28 = vld [vmem:[#allocation11 + $0xd8] sm:$0xff] }
 0x1db   : > { %2633 = vmatpush1.bf16.msra.mxu1 %v2632_v32  ;;  %v2674_v32 = vpack.c.bf16 %v1370_v30, %v1368_v29  ;;  %v2722_v29 = vpack.c.bf16 %v1527_v28, %v1526_v27  ;;  %v1528_v30 = vld [vmem:[#allocation11 + $0xe0] sm:$0xff]  ;;  %v1680_v27 = vld [vmem:[#allocation11 + $0x130] sm:$0xff]  ;;  %v1681_v28 = vld [vmem:[#allocation11 + $0x138] sm:$0xff] }
 0x1dc   : > { %2635 = vmatprep.subr.bf16.mxu1 %v2634_v33  ;;  %v1367_v33 = vld [vmem:[#allocation9 + $0x400] sm:$0xff] }
 0x1dd   : > { %v2676_v37 = vpack.c.bf16 %v1369_v34, %v1367_v33  ;;  %v1530_v33 = vld [vmem:[#allocation11 + $0xf0] sm:$0xff]  ;;  %v1531_v34 = vld [vmem:[#allocation11 + $0xf8] sm:$0xff] }
 0x1df   : > { %2637 = vmatpush1.bf16.msra.mxu1 %v2636_v38  ;;  %v2678_v38 = vpack.c.bf16 %v1374_v36, %v1372_v35  ;;  %v2728_v35 = vpack.c.bf16 %v1531_v34, %v1530_v33  ;;  %v1684_v33 = vld [vmem:[#allocation11 + $0x150] sm:$0xff]  ;;  %v1685_v34 = vld [vmem:[#allocation11 + $0x158] sm:$0xff] }
 0x1e0   : > { %2639 = vmatprep.subr.bf16.mxu1 %v2638_v39  ;;  %v1371_v39 = vld [vmem:[#allocation9 + $0x420] sm:$0xff] }
 0x1e3   : > { %2641 = vmatpush1.bf16.msra.mxu1 %v2640_v44  ;;  %v2680_v44 = vpack.c.bf16 %v1373_v40, %v1371_v39 }
 0x1e4   : > { %2643 = vmatprep.subr.bf16.mxu1 %v2642_v45  ;;  %v2682_v45 = vpack.c.bf16 %v1378_v43, %v1376_v42 }
 0x1e6   : > { %1250 = vmatmul.mubr.f32.vlgmr.msra.gmra.mrb[6].mxu1 %v1151_v54  ;;  %v1384_v54 = vld [vmem:[#allocation9 + $0x488] sm:$0xff] }
 0x1e7   : > { %2645 = vmatpush1.bf16.msra.mxu1 %v2644_v50  ;;  %1356 = vmatprep.mubr.f32.mxu1 %v3166_v0  ;;  %v2684_v50 = vpack.c.bf16 %v1377_v47, %v1375_v46 }
 0x1e8   : > { %2647 = vmatprep.subr.bf16.mxu1 %v2646_v51  ;;  %v2686_v51 = vpack.c.bf16 %v1382_v49, %v1380_v48 }
 0x1eb   : > { %2649 = vmatpush1.bf16.msra.mxu1 %v2648_v57  ;;  %v2690_v57 = vpack.c.bf16 %v1386_v55, %v1384_v54  ;;  %v1498_v54 = vld [vmem:[#allocation11] sm:$0xff]  ;;  %v1499_v55 = vld [vmem:[#allocation11 + $0x8] sm:$0xff] }
 0x1ec   : > { %2651 = vmatprep.subr.bf16.mxu1 %v2650_v58  ;;  %v1383_v58 = vld [vmem:[#allocation9 + $0x480] sm:$0xff] }
 0x1ed   : > { %v2692_v62 = vpack.c.bf16 %v1385_v59, %v1383_v58  ;;  %v1501_v58 = vld [vmem:[#allocation11 + $0x18] sm:$0xff] }
 0x1ef   : > { %2653 = vmatpush1.bf16.msra.mxu1 %v2652_v63  ;;  %v2694_v63 = vpack.c.bf16 %v1390_v61, %v1388_v60  ;;  %v1502_v61 = vld [vmem:[#allocation11 + $0x20] sm:$0xff] }
 0x1f0   : > { %2655 = vmatprep.subr.bf16.mxu1 %v2654_v1  ;;  %v1387_v1 = vld [vmem:[#allocation9 + $0x4a0] sm:$0xff] }
 0x1f1   : > { %v2696_v5 = vpack.c.bf16 %v1389_v2, %v1387_v1  ;;  %v1504_v1 = vld [vmem:[#allocation11 + $0x30] sm:$0xff]  ;;  %v1505_v2 = vld [vmem:[#allocation11 + $0x38] sm:$0xff] }
 0x1f3   : > { %2657 = vmatpush1.bf16.msra.mxu1 %v2656_v6  ;;  %v2698_v6 = vpack.c.bf16 %v1394_v4, %v1392_v3  ;;  %v2740_v3 = vpack.c.bf16 %v1505_v2, %v1504_v1  ;;  %v1506_v4 = vld [vmem:[#allocation11 + $0x40] sm:$0xff]  ;;  %v1777_v1 = vld [vmem:[#allocation11 + $0x1f0] sm:$0xff]  ;;  %v1778_v2 = vld [vmem:[#allocation11 + $0x1f8] sm:$0xff] }
 0x1f4   : > { %2659 = vmatprep.subr.bf16.mxu1 %v2658_v7  ;;  %v1391_v7 = vld [vmem:[#allocation9 + $0x4c0] sm:$0xff] }
 0x1f5   : > { %v2700_v12 = vpack.c.bf16 %v1393_v8, %v1391_v7  ;;  %v1508_v7 = vld [vmem:[#allocation11 + $0x50] sm:$0xff]  ;;  %v1509_v8 = vld [vmem:[#allocation11 + $0x58] sm:$0xff] }
 0x1f7   : > { %2661 = vmatpush1.bf16.msra.mxu1 %v2660_v13  ;;  %v2702_v13 = vpack.c.bf16 %v1398_v11, %v1396_v10  ;;  %v2746_v10 = vpack.c.bf16 %v1509_v8, %v1508_v7  ;;  %v1510_v11 = vld [vmem:[#allocation11 + $0x60] sm:$0xff]  ;;  %v1855_v7 = vld [vmem:[#allocation12 + $0x10] sm:$0xff] }
 0x1f8   : > { %2663 = vmatprep.subr.bf16.mxu1 %v2662_v14  ;;  %v1395_v14 = vld [vmem:[#allocation9 + $0x4e0] sm:$0xff] }
 0x1f9   : > { %v2704_v15 = vpack.c.bf16 %v1397_v9, %v1395_v14  ;;  %v1512_v14 = vld [vmem:[#allocation11 + $0x70] sm:$0xff]  ;;  %v1513_v9 = vld [vmem:[#allocation11 + $0x78] sm:$0xff] }
 0x1fb   : > { %2665 = vmatpush1.bf16.msra.mxu1 %v2664_v18  ;;  %v1521_v18 = vld [vmem:[#allocation11 + $0xa8] sm:$0xff] }
 0x1fc   : > { %2667 = vmatprep.subr.bf16.mxu1 %v2666_v19  ;;  %v2713_v19 = vpack.c.bf16 %v1521_v18, %v1520_v17  ;;  %v1675_v17 = vld [vmem:[#allocation11 + $0x108] sm:$0xff] }
 0x1fe   : > { %2714 = vmatpush3.bf16.msra.mxu0 %v2713_v19  ;;  %v1676_v19 = vld [vmem:[#allocation11 + $0x110] sm:$0xff] }
 0x1ff   : > { %2669 = vmatpush1.bf16.msra.mxu1 %v2668_v25  ;;  %2715 = vmatprep.subr.bf16.mxu0 %v3168_v22  ;;  %v1525_v25 = vld [vmem:[#allocation11 + $0xc8] sm:$0xff] }
 0x200   : > { %2671 = vmatprep.subr.bf16.mxu1 %v2670_v26  ;;  %v2719_v26 = vpack.c.bf16 %v1525_v25, %v1524_v24  ;;  %v1678_v24 = vld [vmem:[#allocation11 + $0x120] sm:$0xff]  ;;  %v1679_v25 = vld [vmem:[#allocation11 + $0x128] sm:$0xff] }
 0x202   : > { %2717 = vmatpush3.bf16.msra.mxu0 %v2716_v23  ;;  %v2758_v23 = vpack.c.bf16 %v1677_v20, %v1676_v19  ;;  %v1863_v19 = vld [vmem:[#allocation12 + $0x50] sm:$0xff]  ;;  %v1864_v20 = vld [vmem:[#allocation12 + $0x58] sm:$0xff] }
 0x203   : > { %2673 = vmatpush1.bf16.msra.mxu1 %v2672_v31  ;;  %2718 = vmatprep.subr.bf16.mxu0 %v3168_v22  ;;  %v1529_v31 = vld [vmem:[#allocation11 + $0xe8] sm:$0xff] }
 0x204   : > { %2675 = vmatprep.subr.bf16.mxu1 %v2674_v32  ;;  %v2725_v32 = vpack.c.bf16 %v1529_v31, %v1528_v30  ;;  %v1682_v30 = vld [vmem:[#allocation11 + $0x140] sm:$0xff]  ;;  %v1683_v31 = vld [vmem:[#allocation11 + $0x148] sm:$0xff] }
 0x206   : > { %1357 = vmatmul.mubr.f32.vlgmr.msra.gmra.mrb[6].mxu1 %v1258_v41  ;;  %2720 = vmatpush3.bf16.msra.mxu0 %v2719_v26  ;;  %v2761_v26 = vpack.c.bf16 %v1679_v25, %v1678_v24  ;;  %v1866_v24 = vld [vmem:[#allocation12 + $0x68] sm:$0xff] }
 0x207   : > { %2677 = vmatpush1.bf16.msra.mxu1 %v2676_v37  ;;  %1463 = vmatprep.mubr.f32.mxu1 %v3166_v0 }
 0x208   : > { %2679 = vmatprep.subr.bf16.mxu1 %v2678_v38  ;;  %2721 = vmatprep.subr.bf16.mxu0 %v3168_v22  ;;  %v2179_v38 = vld [vmem:[%s3584_s5 + $0x1] ss:$0 sm:$0xff] }
 0x20a   : > { %2723 = vmatpush3.bf16.msra.mxu0 %v2722_v29  ;;  %v2764_v29 = vpack.c.bf16 %v1681_v28, %v1680_v27  ;;  %v1868_v27 = vld [vmem:[#allocation12 + $0x78] sm:$0xff] }
 0x20b   : > { %2681 = vmatpush1.bf16.msra.mxu1 %v2680_v44  ;;  %2724 = vmatprep.subr.bf16.mxu0 %v3168_v22 }
 0x20c   : > { %2683 = vmatprep.subr.bf16.mxu1 %v2682_v45 }
 0x20e   : > { %2726 = vmatpush3.bf16.msra.mxu0 %v2725_v32  ;;  %v2767_v32 = vpack.c.bf16 %v1683_v31, %v1682_v30  ;;  %v1943_v30 = vld [vmem:[#allocation12 + $0x88] sm:$0xff]  ;;  %v1944_v31 = vld [vmem:[#allocation12 + $0x90] sm:$0xff] }
 0x20f   : > { %2685 = vmatpush1.bf16.msra.mxu1 %v2684_v50  ;;  %2727 = vmatprep.subr.bf16.mxu0 %v3168_v22 }
 0x210   : > { %2687 = vmatprep.subr.bf16.mxu1 %v2686_v51 }
 0x212   : > { %2729 = vmatpush3.bf16.msra.mxu0 %v2728_v35  ;;  %v2770_v35 = vpack.c.bf16 %v1685_v34, %v1684_v33  ;;  %v1945_v33 = vld [vmem:[#allocation12 + $0x98] sm:$0xff] }
 0x213   : > { %2689 = vmatpush1.bf16.msra.mxu1 %v2688_v56  ;;  %2730 = vmatprep.subr.bf16.mxu0 %v3168_v22  ;;  %v2731_v56 = vpack.c.bf16 %v1499_v55, %v1498_v54  ;;  %v1771_v55 = vld [vmem:[#allocation11 + $0x1c0] sm:$0xff]  ;;  %v2830_v34 = vpack.c.bf16 %v1945_v33, %v1944_v31 }
 0x214   : > { %2691 = vmatprep.subr.bf16.mxu1 %v2690_v57  ;;  %v1500_v57 = vld [vmem:[#allocation11 + $0x10] sm:$0xff] }
 0x215   : > { %v2734_v60 = vpack.c.bf16 %v1501_v58, %v1500_v57  ;;  %v1773_v58 = vld [vmem:[#allocation11 + $0x1d0] sm:$0xff] }
 0x217   : > { %2693 = vmatpush1.bf16.msra.mxu1 %v2692_v62  ;;  %v1503_v62 = vld [vmem:[#allocation11 + $0x28] sm:$0xff] }
 0x218   : > { %2695 = vmatprep.subr.bf16.mxu1 %v2694_v63  ;;  %v2737_v63 = vpack.c.bf16 %v1503_v62, %v1502_v61  ;;  %v1775_v61 = vld [vmem:[#allocation11 + $0x1e0] sm:$0xff]  ;;  %v1776_v62 = vld [vmem:[#allocation11 + $0x1e8] sm:$0xff] }
 0x21b   : > { %2697 = vmatpush1.bf16.msra.mxu1 %v2696_v5  ;;  %v1507_v5 = vld [vmem:[#allocation11 + $0x48] sm:$0xff] }
 0x21c   : > { %2699 = vmatprep.subr.bf16.mxu1 %v2698_v6  ;;  %v2743_v6 = vpack.c.bf16 %v1507_v5, %v1506_v4  ;;  %v1853_v5 = vld [vmem:[#allocation12] sm:$0xff] }
 0x21f   : > { %2701 = vmatpush1.bf16.msra.mxu1 %v2700_v12  ;;  %v1511_v12 = vld [vmem:[#allocation11 + $0x68] sm:$0xff] }
 0x220   : > { %2703 = vmatprep.subr.bf16.mxu1 %v2702_v13  ;;  %v2749_v13 = vpack.c.bf16 %v1511_v12, %v1510_v11  ;;  %v1857_v12 = vld [vmem:[#allocation12 + $0x20] sm:$0xff] }
 0x223   : > { %2705 = vmatpush1.bf16.msra.mxu1 %v2704_v15  ;;  %v2752_v15 = vpack.c.bf16 %v1513_v9, %v1512_v14  ;;  %v1859_v9 = vld [vmem:[#allocation12 + $0x30] sm:$0xff] }
 0x224   : > { %2802 = vmatprep.subr.bf16.mxu1 %v3168_v22 }
 0x226   : > { %1464 = vmatmul.mubr.f32.vlgmr.msra.gmra.mrb[6].mxu1 %v1365_v16  ;;  %v1674_v16 = vld [vmem:[#allocation11 + $0x100] sm:$0xff] }
 0x227   : > { %2458 = vmatprep.mubr.msk.f32.mxu1 %vm3169_vm4, %v3166_v0  ;;  %v2755_v18 = vpack.c.bf16 %v1675_v17, %v1674_v16  ;;  %v1862_v17 = vld [vmem:[#allocation12 + $0x48] sm:$0xff] }
 0x2f9   : > { %v1465_v36 = vpop.f32.mrb[6].mxu1 }
 0x2fa   : > { %v1467_v37 = vpop.f32.mrb[7].mxu1 }
 0x2fb   : > { %v1472_v39 = vmax.f32 %v1465_v36, %v1467_v37  ;;  %v1686_v36 = vld [vmem:[#allocation11 + $0x160] sm:$0xff]  ;;  %v1687_v37 = vld [vmem:[#allocation11 + $0x168] sm:$0xff] }
 0x2fd   : > { %v1478_v40 = vadd.f32 %v2179_v38, %v1472_v39  ;;  %v2773_v38 = vpack.c.bf16 %v1687_v37, %v1686_v36  ;;  %v1688_v39 = vld [vmem:[#allocation11 + $0x170] sm:$0xff]  ;;  %v1947_v36 = vld [vmem:[#allocation12 + $0xa8] sm:$0xff] }
 0x2ff   : > { %v1479_v41 = vmax.f32 %v1478_v40, 0.0  ;;  %v1689_v40 = vld [vmem:[#allocation11 + $0x178] sm:$0xff] }
 0x301   : > { %1480 = vst [vmem:[#allocation4] sm:$0xff] %v1479_v41  ;;  %v2776_v41 = vpack.c.bf16 %v1689_v40, %v1688_v39  ;;  %v1949_v39 = vld [vmem:[#allocation12 + $0xb8] sm:$0xff] }
 0x308   : > { %v1481_v42 = vld [vmem:[#allocation4] sm:$0x1]  ;;  %v1482_v43 = vld [vmem:[#allocation4 + $0x1] sm:$0x1]  ;;  %v1485_v44 = vld [vmem:[#allocation4 + $0x2] sm:$0x1] }
 0x309   : > { %v1486_v45 = vld [vmem:[#allocation4 + $0x3] sm:$0x1]  ;;  %v1489_v46 = vld [vmem:[#allocation4 + $0x4] sm:$0x1]  ;;  %v1490_v47 = vld [vmem:[#allocation4 + $0x5] sm:$0x1]  ;;  %v1483_v48 = vmax.f32 %v1481_v42, %v1482_v43 }
 0x30a   : > { %v1487_v49 = vmax.f32 %v1485_v44, %v1486_v45  ;;  %v1493_v50 = vld [vmem:[#allocation4 + $0x6] sm:$0x1]  ;;  %v1494_v51 = vld [vmem:[#allocation4 + $0x7] sm:$0x1]  ;;  %v1491_v52 = vmax.f32 %v1489_v46, %v1490_v47  ;;  %v1763_v42 = vld [vmem:[#allocation11 + $0x180] sm:$0xff] }
 0x30b   : > { %1484 = vst [vmem:[#allocation5] sm:$0x1] %v1483_v48  ;;  %v1495_v53 = vmax.f32 %v1493_v50, %v1494_v51  ;;  %v1764_v43 = vld [vmem:[#allocation11 + $0x188] sm:$0xff]  ;;  %v1765_v45 = vld [vmem:[#allocation11 + $0x190] sm:$0xff]  ;;  %v1766_v46 = vld [vmem:[#allocation11 + $0x198] sm:$0xff] }
 0x30c   : > { %1488 = vst [vmem:[#allocation5 + $0x1] sm:$0x1] %v1487_v49  ;;  %1492 = vst [vmem:[#allocation5 + $0x2] sm:$0x1] %v1491_v52  ;;  %v2779_v44 = vpack.c.bf16 %v1764_v43, %v1763_v42  ;;  %v2782_v48 = vpack.c.bf16 %v1766_v46, %v1765_v45  ;;  %v1767_v49 = vld [vmem:[#allocation11 + $0x1a0] sm:$0xff]  ;;  %v1768_v50 = vld [vmem:[#allocation11 + $0x1a8] sm:$0xff] }
 0x30d   : > { %1496 = vst [vmem:[#allocation5 + $0x3] sm:$0x1] %v1495_v53  ;;  %v2785_v51 = vpack.c.bf16 %v1768_v50, %v1767_v49  ;;  %v1769_v52 = vld [vmem:[#allocation11 + $0x1b0] sm:$0xff]  ;;  %v1770_v53 = vld [vmem:[#allocation11 + $0x1b8] sm:$0xff]  ;;  %v1951_v42 = vld [vmem:[#allocation12 + $0xc8] sm:$0xff] }
 0x30e   : > { %v2788_v54 = vpack.c.bf16 %v1770_v53, %v1769_v52  ;;  %v1953_v45 = vld [vmem:[#allocation12 + $0xd8] sm:$0xff] }
 0x312   : > { %v1497_v21 = vld [vmem:[#allocation5] sm:$0x1] }
 0x313   : > { %v1514_v59 = vld [vmem:[#allocation5 + $0x1] sm:$0x1]  ;;  %v1672_v47 = vld [vmem:[#allocation5 + $0x2] sm:$0x1] }
 0x314   : > { %2319 = vmatmul.mubr.f32.vlgmr.msra.gmra.mrb[6].mxu0 %v1514_v59  ;;  %v1774_v59 = vld [vmem:[#allocation11 + $0x1d8] sm:$0xff] }
 0x315   : > { %2732 = vmatpush3.bf16.msra.mxu0 %v2731_v56  ;;  %2353 = vmatprep.mubr.msk.f32.mxu0 %vm3169_vm4, %v3166_v0  ;;  %v1772_v56 = vld [vmem:[#allocation11 + $0x1c8] sm:$0xff]  ;;  %v1761_v4 = vld [vmem:[#allocation5 + $0x3] sm:$0x1] }
 0x316   : > { %2733 = vmatprep.subr.bf16.mxu0 %v3168_v22  ;;  %v2791_v57 = vpack.c.bf16 %v1772_v56, %v1771_v55 }
 0x319   : > { %2735 = vmatpush3.bf16.msra.mxu0 %v2734_v60  ;;  %v2794_v60 = vpack.c.bf16 %v1774_v59, %v1773_v58  ;;  %v1850_v59 = vld [vmem:[%s3584_s5 + $0x2] sm:$0x1] }
 0x31a   : > { %2736 = vmatprep.subr.bf16.mxu0 %v3168_v22 }
 0x31d   : > { %2738 = vmatpush3.bf16.msra.mxu0 %v2737_v63  ;;  %v2797_v63 = vpack.c.bf16 %v1776_v62, %v1775_v61 }
 0x31e   : > { %2739 = vmatprep.subr.bf16.mxu0 %v3168_v22 }
 0x321   : > { %2741 = vmatpush3.bf16.msra.mxu0 %v2740_v3  ;;  %v2800_v3 = vpack.c.bf16 %v1778_v2, %v1777_v1  ;;  %v1956_v1 = vld [vmem:[#allocation12 + $0xf0] sm:$0xff] }
 0x322   : > { %2742 = vmatprep.subr.bf16.mxu0 %v3168_v22 }
 0x325   : > { %2744 = vmatpush3.bf16.msra.mxu0 %v2743_v6  ;;  %v1854_v6 = vld [vmem:[#allocation12 + $0x8] sm:$0xff] }
 0x326   : > { %2745 = vmatprep.subr.bf16.mxu0 %v3168_v22  ;;  %v2803_v8 = vpack.c.bf16 %v1854_v6, %v1853_v5 }
 0x328   : > { %2804 = vmatpush3.bf16.msra.mxu1 %v2803_v8  ;;  %v1958_v8 = vld [vmem:[%s3584_s5 + $0x4] sm:$0x1] }
 0x329   : > { %2747 = vmatpush3.bf16.msra.mxu0 %v2746_v10  ;;  %v1856_v10 = vld [vmem:[#allocation12 + $0x18] sm:$0xff]  ;;  %2805 = vmatprep.subr.bf16.mxu1 %v3168_v22 }
 0x32a   : > { %2748 = vmatprep.subr.bf16.mxu0 %v3168_v22  ;;  %v2806_v11 = vpack.c.bf16 %v1856_v10, %v1855_v7 }
 0x32c   : > { %2807 = vmatpush3.bf16.msra.mxu1 %v2806_v11 }
 0x32d   : > { %2750 = vmatpush3.bf16.msra.mxu0 %v2749_v13  ;;  %v1858_v13 = vld [vmem:[#allocation12 + $0x28] sm:$0xff]  ;;  %2808 = vmatprep.subr.bf16.mxu1 %v3168_v22 }
 0x32e   : > { %2751 = vmatprep.subr.bf16.mxu0 %v3168_v22  ;;  %v2809_v14 = vpack.c.bf16 %v1858_v13, %v1857_v12 }
 0x330   : > { %2810 = vmatpush3.bf16.msra.mxu1 %v2809_v14 }
 0x331   : > { %2753 = vmatpush3.bf16.msra.mxu0 %v2752_v15  ;;  %v1860_v15 = vld [vmem:[#allocation12 + $0x38] sm:$0xff]  ;;  %2811 = vmatprep.subr.bf16.mxu1 %v3168_v22 }
 0x332   : > { %2754 = vmatprep.subr.bf16.mxu0 %v3168_v22  ;;  %v2812_v16 = vpack.c.bf16 %v1860_v15, %v1859_v9 }
 0x334   : > { %2354 = vmatmul.mubr.f32.vlgmr.msra.gmra.mrb[8].mxu0 %v1497_v21  ;;  %2813 = vmatpush3.bf16.msra.mxu1 %v2812_v16  ;;  %v2818_v21 = vpack.c.bf16 %v1864_v20, %v1863_v19 }
 0x335   : > { %2756 = vmatpush3.bf16.msra.mxu0 %v2755_v18  ;;  %2388 = vmatprep.mubr.msk.f32.mxu0 %vm3169_vm4, %v3166_v0 }
 0x336   : > { %2757 = vmatprep.subr.bf16.mxu0 %v3168_v22  ;;  %2814 = vmatprep.subr.bf16.mxu1 %v3168_v22 }
 0x339   : > { %2759 = vmatpush3.bf16.msra.mxu0 %v2758_v23  ;;  %v1865_v23 = vld [vmem:[#allocation12 + $0x60] sm:$0xff] }
 0x33a   : > { %2760 = vmatprep.subr.bf16.mxu0 %v3168_v22  ;;  %v2821_v25 = vpack.c.bf16 %v1866_v24, %v1865_v23 }
 0x33d   : > { %2762 = vmatpush3.bf16.msra.mxu0 %v2761_v26  ;;  %v1867_v26 = vld [vmem:[#allocation12 + $0x70] sm:$0xff] }
 0x33e   : > { %2763 = vmatprep.subr.bf16.mxu0 %v3168_v22  ;;  %v2824_v28 = vpack.c.bf16 %v1868_v27, %v1867_v26 }
 0x341   : > { %2765 = vmatpush3.bf16.msra.mxu0 %v2764_v29  ;;  %v1942_v29 = vld [vmem:[#allocation12 + $0x80] sm:$0xff] }
 0x342   : > { %2766 = vmatprep.subr.bf16.mxu0 %v3168_v22 }
 0x345   : > { %2768 = vmatpush3.bf16.msra.mxu0 %v2767_v32  ;;  %v2827_v32 = vpack.c.bf16 %v1943_v30, %v1942_v29 }
 0x346   : > { %2769 = vmatprep.subr.bf16.mxu0 %v3168_v22 }
 0x349   : > { %2771 = vmatpush3.bf16.msra.mxu0 %v2770_v35  ;;  %v1946_v35 = vld [vmem:[#allocation12 + $0xa0] sm:$0xff] }
 0x34a   : > { %2772 = vmatprep.subr.bf16.mxu0 %v3168_v22  ;;  %v2833_v37 = vpack.c.bf16 %v1947_v36, %v1946_v35 }
 0x34d   : > { %2774 = vmatpush3.bf16.msra.mxu0 %v2773_v38  ;;  %v1948_v38 = vld [vmem:[#allocation12 + $0xb0] sm:$0xff] }
 0x34e   : > { %2775 = vmatprep.subr.bf16.mxu0 %v3168_v22  ;;  %v2836_v40 = vpack.c.bf16 %v1949_v39, %v1948_v38 }
 0x351   : > { %2777 = vmatpush3.bf16.msra.mxu0 %v2776_v41  ;;  %v1950_v41 = vld [vmem:[#allocation12 + $0xc0] sm:$0xff] }
 0x352   : > { %2778 = vmatprep.subr.bf16.mxu0 %v3168_v22  ;;  %v2839_v43 = vpack.c.bf16 %v1951_v42, %v1950_v41 }
 0x354   : > { %2389 = vmatmul.mubr.f32.vlgmr.msra.gmra.mrb[10].mxu0 %v1672_v47  ;;  %v1954_v47 = vld [vmem:[#allocation12 + $0xe0] sm:$0xff] }
 0x355   : > { %2780 = vmatpush3.bf16.msra.mxu0 %v2779_v44  ;;  %2423 = vmatprep.mubr.msk.f32.mxu0 %vm3169_vm4, %v3166_v0  ;;  %v1952_v44 = vld [vmem:[#allocation12 + $0xd0] sm:$0xff] }
 0x356   : > { %2781 = vmatprep.subr.bf16.mxu0 %v3168_v22  ;;  %v2842_v46 = vpack.c.bf16 %v1953_v45, %v1952_v44 }
 0x359   : > { %2783 = vmatpush3.bf16.msra.mxu0 %v2782_v48  ;;  %v1955_v48 = vld [vmem:[#allocation12 + $0xe8] sm:$0xff] }
 0x35a   : > { %2784 = vmatprep.subr.bf16.mxu0 %v3168_v22  ;;  %v2845_v49 = vpack.c.bf16 %v1955_v48, %v1954_v47 }
 0x35d   : > { %2786 = vmatpush3.bf16.msra.mxu0 %v2785_v51 }
 0x35e   : > { %2787 = vmatprep.subr.bf16.mxu0 %v3168_v22 }
 0x361   : > { %2789 = vmatpush3.bf16.msra.mxu0 %v2788_v54 }
 0x362   : > { %2790 = vmatprep.subr.bf16.mxu0 %v3168_v22 }
 0x365   : > { %2792 = vmatpush3.bf16.msra.mxu0 %v2791_v57 }
 0x366   : > { %2793 = vmatprep.subr.bf16.mxu0 %v3168_v22 }
 0x369   : > { %2795 = vmatpush3.bf16.msra.mxu0 %v2794_v60 }
 0x36a   : > { %2796 = vmatprep.subr.bf16.mxu0 %v3168_v22 }
 0x36d   : > { %2798 = vmatpush3.bf16.msra.mxu0 %v2797_v63 }
 0x36e   : > { %2799 = vmatprep.subr.bf16.mxu0 %v3168_v22 }
 0x371   : > { %2801 = vmatpush3.bf16.msra.mxu0 %v2800_v3  ;;  %v1869_v3 = vld [vmem:[%s3584_s5 + $0x3] sm:$0x1] }
 0x372   : > { %2826 = vmatprep.subr.bf16.mxu0 %v3168_v22 }
 0x374   : > { %2424 = vmatmul.mubr.f32.vlgmr.msra.gmra.mrb[12].mxu0 %v1761_v4 }
 0x375   : > { %2493 = vmatprep.mubr.msk.f32.mxu0 %vm3169_vm4, %v3166_v0  ;;  %v1861_v0 = vld [vmem:[#allocation12 + $0x40] sm:$0xff]  ;;  %2828 = vmatpush3.bf16.msra.mxu0 %v2827_v32 }
 0x376   : > { %v2815_v18 = vpack.c.bf16 %v1862_v17, %v1861_v0  ;;  %2829 = vmatprep.subr.bf16.mxu0 %v3168_v22 }
 0x378   : > { %2816 = vmatpush3.bf16.msra.mxu1 %v2815_v18 }
 0x379   : > { %2817 = vmatprep.subr.bf16.mxu1 %v3168_v22  ;;  %2831 = vmatpush3.bf16.msra.mxu0 %v2830_v34 }
 0x37a   : > { %2832 = vmatprep.subr.bf16.mxu0 %v3168_v22 }
 0x37c   : > { %2819 = vmatpush3.bf16.msra.mxu1 %v2818_v21 }
 0x37d   : > { %2820 = vmatprep.subr.bf16.mxu1 %v3168_v22  ;;  %2834 = vmatpush3.bf16.msra.mxu0 %v2833_v37 }
 0x37e   : > { %2835 = vmatprep.subr.bf16.mxu0 %v3168_v22 }
 0x380   : > { %2822 = vmatpush3.bf16.msra.mxu1 %v2821_v25 }
 0x381   : > { %2823 = vmatprep.subr.bf16.mxu1 %v3168_v22  ;;  %2837 = vmatpush3.bf16.msra.mxu0 %v2836_v40 }
 0x382   : > { %2838 = vmatprep.subr.bf16.mxu0 %v3168_v22 }
 0x384   : > { %2825 = vmatpush3.bf16.msra.mxu1 %v2824_v28 }
 0x385   : > { %2840 = vmatpush3.bf16.msra.mxu0 %v2839_v43 }
 0x386   : > { %2841 = vmatprep.subr.bf16.mxu0 %v3168_v22 }
 0x389   : > { %2843 = vmatpush3.bf16.msra.mxu0 %v2842_v46 }
 0x38a   : > { %2844 = vmatprep.subr.bf16.mxu0 %v3168_v22 }
 0x38d   : > { %2846 = vmatpush3.bf16.msra.mxu0 %v2845_v49 }
 0x38e   : > { %2847 = vmatprep.subr.bf16.mxu0 %v3168_v22  ;;  %v1957_v22 = vld [vmem:[#allocation12 + $0xf8] sm:$0xff] }
 0x38f   : > { %v2848_v2 = vpack.c.bf16 %v1957_v22, %v1956_v1 }
 0x391   : > { %2849 = vmatpush3.bf16.msra.mxu0 %v2848_v2 }
 0x3e7   : > { %v1598_v50 = vpop.f32.mrb[6].mxu0 }
 0x3e8   : > { %v2320_v51 = vpop.f32.mrb[7].mxu0 }
 0x407   : > { %v1668_v52 = vpop.f32.mrb[8].mxu0 }
 0x408   : > { %v1669_v53 = vadd.f32 %v1668_v52, %v1598_v50  ;;  %v2355_v54 = vpop.f32.mrb[9].mxu0 }
 0x427   : > { %v1756_v55 = vpop.f32.mrb[10].mxu0 }
 0x428   : > { %v1760_v56 = vadd.f32 %v1756_v55, %v1669_v53  ;;  %v2390_v57 = vpop.f32.mrb[11].mxu0 }
 0x447   : > { %v1845_v58 = vpop.f32.mrb[12].mxu0 }
 0x448   : > { %v1849_v60 = vadd.f32 %v1845_v58, %v1760_v56  ;;  %v2425_v61 = vpop.f32.mrb[13].mxu0 }
 0x44a   : > { %v1851_v62 = vadd.f32 %v1850_v59, %v1849_v60 }
 0x44c   : > { %v1852_v63 = vmax.f32 %v1851_v62, 0.0 }
 0x44e   : > { %2459 = vmatmul.mubr.f32.vlgmr.msra.gmra.mrb[8].mxu1 %v1852_v63 }
 0x521   : > { %v1936_v4 = vpop.f32.mrb[8].mxu1 }
 0x522   : > { %v1937_v5 = vadd.f32 %v1936_v4, %v1869_v3  ;;  %v2460_v6 = vpop.f32.mrb[9].mxu1 }
 0x524   : > { %v1940_v7 = vmax.f32 %v1937_v5, 0.0 }
 0x526   : > { %2494 = vmatmul.mubr.f32.vlgmr.msra.gmra.mrb[14].mxu0 %v1940_v7 }
 0x5f9   : > { %v2025_v10 = vpop.f32.mrb[14].mxu0 }
 0x5fa   : > { %v2026_v11 = vadd.f32 %v2025_v10, %v1958_v8  ;;  %v2495_v12 = vpop.f32.mrb[15].mxu0 }
 0x5fc   : > { %2029 = vst [vmem:[%s302_s9] sm:$0x1] %v2026_v11 }
 0x5fd   : > { %3095 = shalt.err (!%p3092_p10)
}
 0x5fe   : > { %s3096_s26 = scalar_lea.hbm %s3537_s15, 16  ;;  %s3100_s13 = scalar_lea.hbm %s3585_s6, 32 }
 0x5ff   : > { %p3097_p0 = scmp.ne.s32.totalorder %s3537_s15, %s3096_s26  ;;  %p3101_p4 = scmp.lt.u32.totalorder %s3537_s15, %s3585_s6 }
 0x600   : > { %p3102_p12 = scmp.lt.u32.totalorder %s3100_s13, %s3096_s26  ;;  %p3104_p8 = scmp.lt.u32.totalorder %s3096_s26, %s3537_s15 }
 0x601   : > { %p3098_p2 = pnand %p3097_p0, %p3606_p11 }
 0x602   : > { %p3103_p7 = por %p3102_p12, %p3101_p4 }
 0x603   : > { %p3099_p3 = pneg %p3098_p2 }
 0x604   : > { %p3105_p13 = por %p3104_p8, %p3103_p7 }
 0x606   : > { %p3106_p1 = pnand %p3105_p13, %p3099_p3 }
 0x608   : > { %3109 = shalt.err (!%p3106_p1)
}
 0x609   : > { %2898 = dma.vmem_to_hbm [thread:$0]  (%p3606_p11), %s3539_s12, 16, %s3537_s15, %s2031_s30  }
 0x60a PF: > { %p2925_p6 = scmp.ge.s32.totalorder %s3156_s24, 2  ;;  %s2055_s17 = sand.u32 1, %s3144_s21  }
 0x60b   : > { %p3607_p9 = scmp.ne.s32.totalorder %s3593_s8, 0  ;;  %s2056_s23 = scalar_lea.sflag [#allocation8], %s2055_s17 }
 0x60d   : > { %p2914_p5 = pnand %p2925_p6, %p3607_p9 }
 0x60f   : > { %3139 = dma.done.wait (!%p2914_p5), %s2056_s23, 16  }
 0x610   : > { %3141 = vsyncadd (!%p2914_p5), %s2056_s23, 4294967280  ;;  %s3608_s9 = sld [smem:[#allocation19_spill]]  ;;  %s3609_s23 = sld [smem:[#allocation20_spill]] }
 0x611   : > { %p19_p10 = scmp.ge.s32.totalorder %s3231_s27, 4   ;;  %s3610_s21 = smov %s3148_s22 }
 0x612   : > { %s3612_s24 = smov %s3231_s27 }
 0x613   :  { %21 = sbr.rel (!%p19_p10) target bundleno = 6 (0x6), region = 108 }
 0x616   : > { %s3611_s22 = smov %s3608_s9 }
 0x61a   :  { %2060 = vsyncpa [#allocation7], 1 }
 0x61b   :  { %2062 = vsyncpa [#allocation7 + $0x1], 1 }
 0x61c   :  { %2063 = vsyncpa [#allocation10], 1 }
 0x61d   :  { %2064 = vsyncpa [#allocation13], 1 }
 0x61e   :  { %2065 = vsyncpa [#allocation8], 1 }
 0x61f   :  { %2067 = vsyncpa [#allocation8 + $0x1], 1 }

</bundles_post_ra>
